<compile_context>
chip_gen: v7x
topology: tpu7x:2x2x1
jax: 0.10.0
libtpu: 0.0.40
codegen_flags: <defaults>
</compile_context>

<pallas_src>
import jax
import jax.numpy as jnp
from jax import lax
from jax.experimental import pallas as pl
from jax.experimental.pallas import tpu as pltpu

# Set to jnp.bfloat16 on v6e/v7x for ~2x MXU throughput and half the im2col
# HBM/VMEM traffic (f32 accumulation kept).  Default f32 to match PyTorch
# numerics exactly.
CONV_MATMUL_DTYPE = jnp.float32


def _round_up(x, m):
    return (x + m - 1) // m * m


# ---------------------------------------------------------------------------
# Pallas kernels
# ---------------------------------------------------------------------------
def _conv_relu_kernel(w_ref, b_ref, x_ref, o_ref):
    """o = relu(w @ x + b). w:(Cout,K2) b:(Cout,1) x:(K2,tm) o:(Cout,tm)."""
    y = jnp.dot(w_ref[...], x_ref[...], preferred_element_type=jnp.float32)
    o_ref[...] = jnp.maximum(y + b_ref[...], 0.0).astype(o_ref.dtype)


def _maxpool4_kernel(x_ref, o_ref):
    """x:(4, C, tn) window planes -> o:(C, tn) elementwise max."""
    o_ref[...] = jnp.maximum(jnp.maximum(x_ref[0], x_ref[1]),
                             jnp.maximum(x_ref[2], x_ref[3]))


def _fc_chain_kernel(x_ref, w1_ref, b1_ref, w2_ref, b2_ref, w3_ref, b3_ref,
                     o_ref):
    """Fused fc1(relu) -> fc2(relu) -> fc3 -> softmax(dim=-1)."""
    h = jnp.dot(x_ref[...], w1_ref[...],
                preferred_element_type=jnp.float32) + b1_ref[...]
    h = jnp.maximum(h, 0.0)
    h = jnp.dot(h, w2_ref[...],
                preferred_element_type=jnp.float32) + b2_ref[...]
    h = jnp.maximum(h, 0.0)
    z = jnp.dot(h, w3_ref[...],
                preferred_element_type=jnp.float32) + b3_ref[...]
    z = z - jnp.max(z, axis=-1, keepdims=True)
    e = jnp.exp(z)
    inv = pl.reciprocal(jnp.sum(e, axis=-1, keepdims=True), approx=True)
    o_ref[...] = (e * inv).astype(o_ref.dtype)


# ---------------------------------------------------------------------------
# Pallas wrappers
# ---------------------------------------------------------------------------
def _conv_matmul_relu(w2d, b2d, cols, tile_m=512):
    """relu(w2d @ cols + b2d).  w2d:(Cout,K2)  b2d:(Cout,1)  cols:(K2,M)."""
    Cout, K2 = w2d.shape
    M = cols.shape[1]
    if M <= 2 * tile_m:
        tm, Mp = M, M                      # single full-dim block (always legal)
    else:
        tm = tile_m                        # multiple of 128 -> lane-aligned tiles
        Mp = _round_up(M, tm)
        if Mp != M:
            cols = jnp.pad(cols, ((0, 0), (0, Mp - M)))
    cdt = CONV_MATMUL_DTYPE
    out = pl.pallas_call(
        _conv_relu_kernel,
        out_shape=jax.ShapeDtypeStruct((Cout, Mp), jnp.float32),
        grid=(Mp // tm,),
        in_specs=[
            pl.BlockSpec((Cout, K2), lambda i: (0, 0)),   # weights: VMEM-resident
            pl.BlockSpec((Cout, 1), lambda i: (0, 0)),    # bias:    VMEM-resident
            pl.BlockSpec((K2, tm), lambda i: (0, i)),     # im2col tile (pipelined)
        ],
        out_specs=pl.BlockSpec((Cout, tm), lambda i: (0, i)),
        compiler_params=pltpu.CompilerParams(
            dimension_semantics=("parallel",)),
    )(w2d.astype(cdt), b2d, cols.astype(cdt))
    return out[:, :M] if Mp != M else out


def conv2d_relu(x, w2d, b2d, K, lhs_spec):
    """Valid conv (stride 1) + ReLU via transposed im2col matmul.

    x is NCHW for the first layer or (C, B, H, W) for internal layers.
    Returns the activation in (Cout, B*Ho*Wo) layout, columns ordered (b, h, w).
    """
    # Patch channels come out ordered (cin, kh, kw) == PyTorch weight.reshape.
    cols = lax.conv_general_dilated_patches(
        x, filter_shape=(K, K), window_strides=(1, 1), padding="VALID",
        dimension_numbers=(lhs_spec, "OIHW", "CNHW"))
    K2, B, Ho, Wo = cols.shape
    cols = cols.reshape(K2, B * Ho * Wo)
    return _conv_matmul_relu(w2d, b2d, cols), (B, Ho, Wo)


def maxpool2x2(y, C, B, H, W, tile_n=2048):
    """2x2 / stride-2 max pool on a (C, B*H*W) activation -> (C, B*Hh*Wh)."""
    Hh, Wh = H // 2, W // 2
    N = B * Hh * Wh
    y6 = y.reshape(C, B, Hh, 2, Wh, 2)
    # Four window planes on the leading axis; lanes stay the long B*Hh*Wh axis.
    planes = jnp.stack(
        [y6[:, :, :, 0, :, 0], y6[:, :, :, 0, :, 1],
         y6[:, :, :, 1, :, 0], y6[:, :, :, 1, :, 1]], axis=0,
    ).reshape(4, C, N)
    if N <= tile_n:
        tn, Np = N, N
    else:
        tn = tile_n
        Np = _round_up(N, tn)
        planes = jnp.pad(planes, ((0, 0), (0, 0), (0, Np - N)))
    out = pl.pallas_call(
        _maxpool4_kernel,
        out_shape=jax.ShapeDtypeStruct((C, Np), jnp.float32),
        grid=(Np // tn,),
        in_specs=[pl.BlockSpec((4, C, tn), lambda i: (0, 0, i))],
        out_specs=pl.BlockSpec((C, tn), lambda i: (0, i)),
        compiler_params=pltpu.CompilerParams(
            dimension_semantics=("parallel",)),
    )(planes)
    return out[:, :N] if Np != N else out


def fc_chain_softmax(x, w1, b1, w2, b2, w3, b3, tile_b=256):
    """softmax(relu(relu(x@w1+b1)@w2+b2)@w3+b3) in a single fused kernel."""
    B, F = x.shape
    N1, N2, N3 = w1.shape[1], w2.shape[1], w3.shape[1]
    if B <= tile_b:
        tb, Bp = B, B
    else:
        tb = tile_b
        Bp = _round_up(B, tb)
        x = jnp.pad(x, ((0, Bp - B), (0, 0)))
    out = pl.pallas_call(
        _fc_chain_kernel,
        out_shape=jax.ShapeDtypeStruct((Bp, N3), jnp.float32),
        grid=(Bp // tb,),
        in_specs=[
            pl.BlockSpec((tb, F), lambda i: (i, 0)),      # activation row tile
            pl.BlockSpec((F, N1), lambda i: (0, 0)),      # all weights resident
            pl.BlockSpec((1, N1), lambda i: (0, 0)),
            pl.BlockSpec((N1, N2), lambda i: (0, 0)),
            pl.BlockSpec((1, N2), lambda i: (0, 0)),
            pl.BlockSpec((N2, N3), lambda i: (0, 0)),
            pl.BlockSpec((1, N3), lambda i: (0, 0)),
        ],
        out_specs=pl.BlockSpec((tb, N3), lambda i: (i, 0)),
        compiler_params=pltpu.CompilerParams(
            dimension_semantics=("parallel",)),
    )(x, w1, b1.reshape(1, N1), w2, b2.reshape(1, N2), w3, b3.reshape(1, N3))
    return out[:B] if Bp != B else out


# ---------------------------------------------------------------------------
# Net forward (matches the PyTorch module semantics)
# ---------------------------------------------------------------------------
def net_forward(p, x):
    """x: (B, 3, 32, 32) f32 NCHW -> (B, 10) softmax probabilities."""
    B = x.shape[0]
    # conv1 + relu : (B,3,32,32) -> (6, B*28*28)
    a1, (_, H1, W1) = conv2d_relu(x, p["conv1_w2d"], p["conv1_b2d"],
                                  K=5, lhs_spec="NCHW")
    a1 = maxpool2x2(a1, C=6, B=B, H=H1, W=W1)                   # (6, B*14*14)
    # conv2 + relu on the internal (C, B, H, W) layout : -> (16, B*10*10)
    a2, (_, H2, W2) = conv2d_relu(a1.reshape(6, B, H1 // 2, W1 // 2),
                                  p["conv2_w2d"], p["conv2_b2d"],
                                  K=5, lhs_spec="CNHW")
    a2 = maxpool2x2(a2, C=16, B=B, H=H2, W=W2)                  # (16, B*5*5)
    # flatten to PyTorch's view(-1, 400) order: per image (c, h, w)
    feat = a2.reshape(16, B, 25).transpose(1, 0, 2).reshape(B, 16 * 5 * 5)
    # fused fc1 -> fc2 -> fc3 -> softmax(dim=1)
    return fc_chain_softmax(feat, p["fc1_wT"], p["fc1_b"],
                            p["fc2_wT"], p["fc2_b"],
                            p["fc3_wT"], p["fc3_b"])


# ---------------------------------------------------------------------------
# Parameters
# ---------------------------------------------------------------------------
def init_params(key):
    ks = jax.random.split(key, 10)
    s = 0.1
    return {
        "conv1_w": s * jax.random.normal(ks[0], (6, 3, 5, 5), jnp.float32),
        "conv1_b": s * jax.random.normal(ks[1], (6,), jnp.float32),
        "conv2_w": s * jax.random.normal(ks[2], (16, 6, 5, 5), jnp.float32),
        "conv2_b": s * jax.random.normal(ks[3], (16,), jnp.float32),
        "fc1_w": s * jax.random.normal(ks[4], (120, 400), jnp.float32),
        "fc1_b": s * jax.random.normal(ks[5], (120,), jnp.float32),
        "fc2_w": s * jax.random.normal(ks[6], (84, 120), jnp.float32),
        "fc2_b": s * jax.random.normal(ks[7], (84,), jnp.float32),
        "fc3_w": s * jax.random.normal(ks[8], (10, 84), jnp.float32),
        "fc3_b": s * jax.random.normal(ks[9], (10,), jnp.float32),
    }


def prepare_params(params):
    """One-time re-layout of PyTorch-shaped parameters (no per-call .T/.reshape)."""
    return {
        "conv1_w2d": params["conv1_w"].reshape(6, -1),    # (6, 75)  (cin,kh,kw)
        "conv1_b2d": params["conv1_b"].reshape(6, 1),
        "conv2_w2d": params["conv2_w"].reshape(16, -1),   # (16, 150)
        "conv2_b2d": params["conv2_b"].reshape(16, 1),
        "fc1_wT": params["fc1_w"].T, "fc1_b": params["fc1_b"],
        "fc2_wT": params["fc2_w"].T, "fc2_b": params["fc2_b"],
        "fc3_wT": params["fc3_w"].T, "fc3_b": params["fc3_b"],
    }


# ---------------------------------------------------------------------------
# Plain-XLA f32 reference of the PyTorch module (test harness only)
# ---------------------------------------------------------------------------
def reference_forward(params, x):
    dn = ("NCHW", "OIHW", "NCHW")
    hi = lax.Precision.HIGHEST
    y = lax.conv_general_dilated(x, params["conv1_w"], (1, 1), "VALID",
                                 dimension_numbers=dn, precision=hi)
    y = jnp.maximum(y + params["conv1_b"][None, :, None, None], 0.0)
    y = lax.reduce_window(y, -jnp.inf, lax.max, (1, 1, 2, 2), (1, 1, 2, 2),
                          "VALID")
    y = lax.conv_general_dilated(y, params["conv2_w"], (1, 1), "VALID",
                                 dimension_numbers=dn, precision=hi)
    y = jnp.maximum(y + params["conv2_b"][None, :, None, None], 0.0)
    y = lax.reduce_window(y, -jnp.inf, lax.max, (1, 1, 2, 2), (1, 1, 2, 2),
                          "VALID")
    y = y.reshape(y.shape[0], -1)
    y = jnp.maximum(jnp.dot(y, params["fc1_w"].T, precision=hi)
                    + params["fc1_b"], 0.0)
    y = jnp.maximum(jnp.dot(y, params["fc2_w"].T, precision=hi)
                    + params["fc2_b"], 0.0)
    y = jnp.dot(y, params["fc3_w"].T, precision=hi) + params["fc3_b"]
    return jax.nn.softmax(y, axis=1)


if __name__ == "__main__":
    key = jax.random.PRNGKey(0)
    k_params, k_x = jax.random.split(key)
    params = init_params(k_params)
    # CIFAR-sized input is required by fc1 (16*5*5 = 400): (B, 3, 32, 32).
    x = jax.random.normal(k_x, (2, 3, 32, 32), jnp.float32)

    prepared = prepare_params(params)
    out = jax.block_until_ready(jax.jit(net_forward)(prepared, x))

    assert out.shape == (2, 10), out.shape
    assert bool(jnp.all(jnp.isfinite(out)))
    # tolerance is loose only because of the approx reciprocal in the softmax
    assert bool(jnp.allclose(jnp.sum(out, axis=1), 1.0, atol=1e-2))

    # cross-check against the plain-XLA f32 reference of the PyTorch module
    ref = jax.block_until_ready(jax.jit(reference_forward)(params, x))
    max_err = float(jnp.max(jnp.abs(out - ref)))
    assert max_err < 1e-2, max_err

    print("KERNEL_OK")
</pallas_src>

<mosaic_0001>
module attributes {stable_mosaic.version = 11 : i64} {
  func.func @_conv_relu_kernel(%arg0: i32, %arg1: memref<6x75xf32, #tpu.memory_space<vmem>>, %arg2: memref<6x1xf32, #tpu.memory_space<vmem>>, %arg3: memref<75x512xf32, #tpu.memory_space<vmem>>, %arg4: memref<6x512xf32, #tpu.memory_space<vmem>>) attributes {dimension_semantics = [#tpu.dimension_semantics<parallel>], iteration_bounds = array<i64: 4>, scalar_prefetch = 0 : i64, scratch_operands = 0 : i64, tpu.core_type = #tpu.core_type<tc>, window_params = [{pipeline_mode = #tpu.pipeline_mode<synchronous>, transform_indices = @transform_0, window_bounds = array<i64: 6, 75>}, {pipeline_mode = #tpu.pipeline_mode<synchronous>, transform_indices = @transform_1, window_bounds = array<i64: 6, 1>}, {transform_indices = @transform_2, window_bounds = array<i64: 75, 512>}, {transform_indices = @transform_3, window_bounds = array<i64: 6, 512>}]} {
    %c0 = arith.constant 0 : index
    %c0_0 = arith.constant 0 : index
    %0 = vector.load %arg1[%c0, %c0_0] : memref<6x75xf32, #tpu.memory_space<vmem>>, vector<6x75xf32>
    %c0_1 = arith.constant 0 : index
    %c0_2 = arith.constant 0 : index
    %1 = vector.load %arg3[%c0_1, %c0_2] : memref<75x512xf32, #tpu.memory_space<vmem>>, vector<75x512xf32>
    %cst = arith.constant dense<0.000000e+00> : vector<6x512xf32>
    %2 = tpu.matmul %0, %1, %cst {dimension_numbers = #tpu.dot_dimension_numbers<[1], [0], [0], [1], [0, 0, 1, 1], [], []>} : vector<6x75xf32>, vector<75x512xf32>, vector<6x512xf32> -> vector<6x512xf32>
    %c0_3 = arith.constant 0 : index
    %c0_4 = arith.constant 0 : index
    %3 = vector.load %arg2[%c0_3, %c0_4] : memref<6x1xf32, #tpu.memory_space<vmem>>, vector<6x1xf32>
    %4 = vector.broadcast %3 : vector<6x1xf32> to vector<6x512xf32>
    %5 = arith.addf %2, %4 : vector<6x512xf32>
    %cst_5 = arith.constant 0.000000e+00 : f32
    %6 = vector.broadcast %cst_5 : f32 to vector<6x512xf32>
    %7 = arith.maximumf %5, %6 : vector<6x512xf32>
    %c0_6 = arith.constant 0 : index
    %c0_7 = arith.constant 0 : index
    %8 = vector.load %arg4[%c0_6, %c0_7] : memref<6x512xf32, #tpu.memory_space<vmem>>, vector<6x512xf32>
    tpu.vector_store %arg4[%c0_6, %c0_7], %7 {strides = array<i32>} : memref<6x512xf32, #tpu.memory_space<vmem>>, vector<6x512xf32>,
    return
  }
  func.func @transform_0(%arg0: i32) -> (i32, i32) {
    %c0_i32 = arith.constant 0 : i32
    %c0_i32_0 = arith.constant 0 : i32
    %c0_i32_1 = arith.constant 0 : i32
    return %c0_i32, %c0_i32_0 : i32, i32
  }
  func.func @transform_1(%arg0: i32) -> (i32, i32) {
    %c0_i32 = arith.constant 0 : i32
    %c0_i32_0 = arith.constant 0 : i32
    %c0_i32_1 = arith.constant 0 : i32
    return %c0_i32, %c0_i32_0 : i32, i32
  }
  func.func @transform_2(%arg0: i32) -> (i32, i32) {
    %c0_i32 = arith.constant 0 : i32
    %c0_i32_0 = arith.constant 0 : i32
    return %c0_i32, %arg0 : i32, i32
  }
  func.func @transform_3(%arg0: i32) -> (i32, i32) {
    %c0_i32 = arith.constant 0 : i32
    %c0_i32_0 = arith.constant 0 : i32
    return %c0_i32, %arg0 : i32, i32
  }
}

module attributes {stable_mosaic.version = 11 : i64} {
  func.func @_maxpool4_kernel(%arg0: i32, %arg1: memref<4x6x392xf32, #tpu.memory_space<vmem>>, %arg2: memref<6x392xf32, #tpu.memory_space<vmem>>) attributes {dimension_semantics = [#tpu.dimension_semantics<parallel>], iteration_bounds = array<i64: 1>, scalar_prefetch = 0 : i64, scratch_operands = 0 : i64, tpu.core_type = #tpu.core_type<tc>, window_params = [{transform_indices = @transform_0, window_bounds = array<i64: 4, 6, 392>}, {transform_indices = @transform_1, window_bounds = array<i64: 6, 392>}]} {
    %c0 = arith.constant 0 : index
    %c0_0 = arith.constant 0 : index
    %c0_1 = arith.constant 0 : index
    %0 = vector.load %arg1[%c0, %c0_0, %c0_1] : memref<4x6x392xf32, #tpu.memory_space<vmem>>, vector<1x6x392xf32>
    %1 = vector.shape_cast %0 : vector<1x6x392xf32> to vector<6x392xf32>
    %c1 = arith.constant 1 : index
    %c0_2 = arith.constant 0 : index
    %c0_3 = arith.constant 0 : index
    %2 = vector.load %arg1[%c1, %c0_2, %c0_3] : memref<4x6x392xf32, #tpu.memory_space<vmem>>, vector<1x6x392xf32>
    %3 = vector.shape_cast %2 : vector<1x6x392xf32> to vector<6x392xf32>
    %4 = arith.maximumf %1, %3 : vector<6x392xf32>
    %c2 = arith.constant 2 : index
    %c0_4 = arith.constant 0 : index
    %c0_5 = arith.constant 0 : index
    %5 = vector.load %arg1[%c2, %c0_4, %c0_5] : memref<4x6x392xf32, #tpu.memory_space<vmem>>, vector<1x6x392xf32>
    %6 = vector.shape_cast %5 : vector<1x6x392xf32> to vector<6x392xf32>
    %c3 = arith.constant 3 : index
    %c0_6 = arith.constant 0 : index
    %c0_7 = arith.constant 0 : index
    %7 = vector.load %arg1[%c3, %c0_6, %c0_7] : memref<4x6x392xf32, #tpu.memory_space<vmem>>, vector<1x6x392xf32>
    %8 = vector.shape_cast %7 : vector<1x6x392xf32> to vector<6x392xf32>
    %9 = arith.maximumf %6, %8 : vector<6x392xf32>
    %10 = arith.maximumf %4, %9 : vector<6x392xf32>
    %c0_8 = arith.constant 0 : index
    %c0_9 = arith.constant 0 : index
    %11 = vector.load %arg2[%c0_8, %c0_9] : memref<6x392xf32, #tpu.memory_space<vmem>>, vector<6x392xf32>
    tpu.vector_store %arg2[%c0_8, %c0_9], %10 {strides = array<i32>} : memref<6x392xf32, #tpu.memory_space<vmem>>, vector<6x392xf32>,
    return
  }
  func.func @transform_0(%arg0: i32) -> (i32, i32, i32) {
    %c0_i32 = arith.constant 0 : i32
    %c0_i32_0 = arith.constant 0 : i32
    %c0_i32_1 = arith.constant 0 : i32
    return %c0_i32, %c0_i32_0, %arg0 : i32, i32, i32
  }
  func.func @transform_1(%arg0: i32) -> (i32, i32) {
    %c0_i32 = arith.constant 0 : i32
    %c0_i32_0 = arith.constant 0 : i32
    return %c0_i32, %arg0 : i32, i32
  }
}

module attributes {stable_mosaic.version = 11 : i64} {
  func.func @_conv_relu_kernel(%arg0: i32, %arg1: memref<16x150xf32, #tpu.memory_space<vmem>>, %arg2: memref<16x1xf32, #tpu.memory_space<vmem>>, %arg3: memref<150x200xf32, #tpu.memory_space<vmem>>, %arg4: memref<16x200xf32, #tpu.memory_space<vmem>>) attributes {dimension_semantics = [#tpu.dimension_semantics<parallel>], iteration_bounds = array<i64: 1>, scalar_prefetch = 0 : i64, scratch_operands = 0 : i64, tpu.core_type = #tpu.core_type<tc>, window_params = [{pipeline_mode = #tpu.pipeline_mode<synchronous>, transform_indices = @transform_0, window_bounds = array<i64: 16, 150>}, {pipeline_mode = #tpu.pipeline_mode<synchronous>, transform_indices = @transform_1, window_bounds = array<i64: 16, 1>}, {transform_indices = @transform_2, window_bounds = array<i64: 150, 200>}, {transform_indices = @transform_3, window_bounds = array<i64: 16, 200>}]} {
    %c0 = arith.constant 0 : index
    %c0_0 = arith.constant 0 : index
    %0 = vector.load %arg1[%c0, %c0_0] : memref<16x150xf32, #tpu.memory_space<vmem>>, vector<16x150xf32>
    %c0_1 = arith.constant 0 : index
    %c0_2 = arith.constant 0 : index
    %1 = vector.load %arg3[%c0_1, %c0_2] : memref<150x200xf32, #tpu.memory_space<vmem>>, vector<150x200xf32>
    %cst = arith.constant dense<0.000000e+00> : vector<16x200xf32>
    %2 = tpu.matmul %0, %1, %cst {dimension_numbers = #tpu.dot_dimension_numbers<[1], [0], [0], [1], [0, 0, 1, 1], [], []>} : vector<16x150xf32>, vector<150x200xf32>, vector<16x200xf32> -> vector<16x200xf32>
    %c0_3 = arith.constant 0 : index
    %c0_4 = arith.constant 0 : index
    %3 = vector.load %arg2[%c0_3, %c0_4] : memref<16x1xf32, #tpu.memory_space<vmem>>, vector<16x1xf32>
    %4 = vector.broadcast %3 : vector<16x1xf32> to vector<16x200xf32>
    %5 = arith.addf %2, %4 : vector<16x200xf32>
    %cst_5 = arith.constant 0.000000e+00 : f32
    %6 = vector.broadcast %cst_5 : f32 to vector<16x200xf32>
    %7 = arith.maximumf %5, %6 : vector<16x200xf32>
    %c0_6 = arith.constant 0 : index
    %c0_7 = arith.constant 0 : index
    %8 = vector.load %arg4[%c0_6, %c0_7] : memref<16x200xf32, #tpu.memory_space<vmem>>, vector<16x200xf32>
    tpu.vector_store %arg4[%c0_6, %c0_7], %7 {strides = array<i32>} : memref<16x200xf32, #tpu.memory_space<vmem>>, vector<16x200xf32>,
    return
  }
  func.func @transform_0(%arg0: i32) -> (i32, i32) {
    %c0_i32 = arith.constant 0 : i32
    %c0_i32_0 = arith.constant 0 : i32
    %c0_i32_1 = arith.constant 0 : i32
    return %c0_i32, %c0_i32_0 : i32, i32
  }
  func.func @transform_1(%arg0: i32) -> (i32, i32) {
    %c0_i32 = arith.constant 0 : i32
    %c0_i32_0 = arith.constant 0 : i32
    %c0_i32_1 = arith.constant 0 : i32
    return %c0_i32, %c0_i32_0 : i32, i32
  }
  func.func @transform_2(%arg0: i32) -> (i32, i32) {
    %c0_i32 = arith.constant 0 : i32
    %c0_i32_0 = arith.constant 0 : i32
    return %c0_i32, %arg0 : i32, i32
  }
  func.func @transform_3(%arg0: i32) -> (i32, i32) {
    %c0_i32 = arith.constant 0 : i32
    %c0_i32_0 = arith.constant 0 : i32
    return %c0_i32, %arg0 : i32, i32
  }
}

module attributes {stable_mosaic.version = 11 : i64} {
  func.func @_maxpool4_kernel(%arg0: i32, %arg1: memref<4x16x50xf32, #tpu.memory_space<vmem>>, %arg2: memref<16x50xf32, #tpu.memory_space<vmem>>) attributes {dimension_semantics = [#tpu.dimension_semantics<parallel>], iteration_bounds = array<i64: 1>, scalar_prefetch = 0 : i64, scratch_operands = 0 : i64, tpu.core_type = #tpu.core_type<tc>, window_params = [{transform_indices = @transform_0, window_bounds = array<i64: 4, 16, 50>}, {transform_indices = @transform_1, window_bounds = array<i64: 16, 50>}]} {
    %c0 = arith.constant 0 : index
    %c0_0 = arith.constant 0 : index
    %c0_1 = arith.constant 0 : index
    %0 = vector.load %arg1[%c0, %c0_0, %c0_1] : memref<4x16x50xf32, #tpu.memory_space<vmem>>, vector<1x16x50xf32>
    %1 = vector.shape_cast %0 : vector<1x16x50xf32> to vector<16x50xf32>
    %c1 = arith.constant 1 : index
    %c0_2 = arith.constant 0 : index
    %c0_3 = arith.constant 0 : index
    %2 = vector.load %arg1[%c1, %c0_2, %c0_3] : memref<4x16x50xf32, #tpu.memory_space<vmem>>, vector<1x16x50xf32>
    %3 = vector.shape_cast %2 : vector<1x16x50xf32> to vector<16x50xf32>
    %4 = arith.maximumf %1, %3 : vector<16x50xf32>
    %c2 = arith.constant 2 : index
    %c0_4 = arith.constant 0 : index
    %c0_5 = arith.constant 0 : index
    %5 = vector.load %arg1[%c2, %c0_4, %c0_5] : memref<4x16x50xf32, #tpu.memory_space<vmem>>, vector<1x16x50xf32>
    %6 = vector.shape_cast %5 : vector<1x16x50xf32> to vector<16x50xf32>
    %c3 = arith.constant 3 : index
    %c0_6 = arith.constant 0 : index
    %c0_7 = arith.constant 0 : index
    %7 = vector.load %arg1[%c3, %c0_6, %c0_7] : memref<4x16x50xf32, #tpu.memory_space<vmem>>, vector<1x16x50xf32>
    %8 = vector.shape_cast %7 : vector<1x16x50xf32> to vector<16x50xf32>
    %9 = arith.maximumf %6, %8 : vector<16x50xf32>
    %10 = arith.maximumf %4, %9 : vector<16x50xf32>
    %c0_8 = arith.constant 0 : index
    %c0_9 = arith.constant 0 : index
    %11 = vector.load %arg2[%c0_8, %c0_9] : memref<16x50xf32, #tpu.memory_space<vmem>>, vector<16x50xf32>
    tpu.vector_store %arg2[%c0_8, %c0_9], %10 {strides = array<i32>} : memref<16x50xf32, #tpu.memory_space<vmem>>, vector<16x50xf32>,
    return
  }
  func.func @transform_0(%arg0: i32) -> (i32, i32, i32) {
    %c0_i32 = arith.constant 0 : i32
    %c0_i32_0 = arith.constant 0 : i32
    %c0_i32_1 = arith.constant 0 : i32
    return %c0_i32, %c0_i32_0, %arg0 : i32, i32, i32
  }
  func.func @transform_1(%arg0: i32) -> (i32, i32) {
    %c0_i32 = arith.constant 0 : i32
    %c0_i32_0 = arith.constant 0 : i32
    return %c0_i32, %arg0 : i32, i32
  }
}

module attributes {stable_mosaic.version = 11 : i64} {
  func.func @_fc_chain_kernel(%arg0: i32, %arg1: memref<2x400xf32, #tpu.memory_space<vmem>>, %arg2: memref<400x120xf32, #tpu.memory_space<vmem>>, %arg3: memref<1x120xf32, #tpu.memory_space<vmem>>, %arg4: memref<120x84xf32, #tpu.memory_space<vmem>>, %arg5: memref<1x84xf32, #tpu.memory_space<vmem>>, %arg6: memref<84x10xf32, #tpu.memory_space<vmem>>, %arg7: memref<1x10xf32, #tpu.memory_space<vmem>>, %arg8: memref<2x10xf32, #tpu.memory_space<vmem>>) attributes {dimension_semantics = [#tpu.dimension_semantics<parallel>], iteration_bounds = array<i64: 1>, scalar_prefetch = 0 : i64, scratch_operands = 0 : i64, tpu.core_type = #tpu.core_type<tc>, window_params = [{transform_indices = @transform_0, window_bounds = array<i64: 2, 400>}, {pipeline_mode = #tpu.pipeline_mode<synchronous>, transform_indices = @transform_1, window_bounds = array<i64: 400, 120>}, {pipeline_mode = #tpu.pipeline_mode<synchronous>, transform_indices = @transform_2, window_bounds = array<i64: 1, 120>}, {pipeline_mode = #tpu.pipeline_mode<synchronous>, transform_indices = @transform_3, window_bounds = array<i64: 120, 84>}, {pipeline_mode = #tpu.pipeline_mode<synchronous>, transform_indices = @transform_4, window_bounds = array<i64: 1, 84>}, {pipeline_mode = #tpu.pipeline_mode<synchronous>, transform_indices = @transform_5, window_bounds = array<i64: 84, 10>}, {pipeline_mode = #tpu.pipeline_mode<synchronous>, transform_indices = @transform_6, window_bounds = array<i64: 1, 10>}, {transform_indices = @transform_7, window_bounds = array<i64: 2, 10>}]} {
    %c0 = arith.constant 0 : index
    %c0_0 = arith.constant 0 : index
    %0 = vector.load %arg1[%c0, %c0_0] : memref<2x400xf32, #tpu.memory_space<vmem>>, vector<2x400xf32>
    %c0_1 = arith.constant 0 : index
    %c0_2 = arith.constant 0 : index
    %1 = vector.load %arg2[%c0_1, %c0_2] : memref<400x120xf32, #tpu.memory_space<vmem>>, vector<400x120xf32>
    %cst = arith.constant dense<0.000000e+00> : vector<2x120xf32>
    %2 = tpu.matmul %0, %1, %cst {dimension_numbers = #tpu.dot_dimension_numbers<[1], [0], [0], [1], [0, 0, 1, 1], [], []>} : vector<2x400xf32>, vector<400x120xf32>, vector<2x120xf32> -> vector<2x120xf32>
    %c0_3 = arith.constant 0 : index
    %c0_4 = arith.constant 0 : index
    %3 = vector.load %arg3[%c0_3, %c0_4] : memref<1x120xf32, #tpu.memory_space<vmem>>, vector<1x120xf32>
    %4 = vector.broadcast %3 : vector<1x120xf32> to vector<2x120xf32>
    %5 = arith.addf %2, %4 : vector<2x120xf32>
    %cst_5 = arith.constant 0.000000e+00 : f32
    %6 = vector.broadcast %cst_5 : f32 to vector<2x120xf32>
    %7 = arith.maximumf %5, %6 : vector<2x120xf32>
    %c0_6 = arith.constant 0 : index
    %c0_7 = arith.constant 0 : index
    %8 = vector.load %arg4[%c0_6, %c0_7] : memref<120x84xf32, #tpu.memory_space<vmem>>, vector<120x84xf32>
    %cst_8 = arith.constant dense<0.000000e+00> : vector<2x84xf32>
    %9 = tpu.matmul %7, %8, %cst_8 {dimension_numbers = #tpu.dot_dimension_numbers<[1], [0], [0], [1], [0, 0, 1, 1], [], []>} : vector<2x120xf32>, vector<120x84xf32>, vector<2x84xf32> -> vector<2x84xf32>
    %c0_9 = arith.constant 0 : index
    %c0_10 = arith.constant 0 : index
    %10 = vector.load %arg5[%c0_9, %c0_10] : memref<1x84xf32, #tpu.memory_space<vmem>>, vector<1x84xf32>
    %11 = vector.broadcast %10 : vector<1x84xf32> to vector<2x84xf32>
    %12 = arith.addf %9, %11 : vector<2x84xf32>
    %cst_11 = arith.constant 0.000000e+00 : f32
    %13 = vector.broadcast %cst_11 : f32 to vector<2x84xf32>
    %14 = arith.maximumf %12, %13 : vector<2x84xf32>
    %c0_12 = arith.constant 0 : index
    %c0_13 = arith.constant 0 : index
    %15 = vector.load %arg6[%c0_12, %c0_13] : memref<84x10xf32, #tpu.memory_space<vmem>>, vector<84x10xf32>
    %cst_14 = arith.constant dense<0.000000e+00> : vector<2x10xf32>
    %16 = tpu.matmul %14, %15, %cst_14 {dimension_numbers = #tpu.dot_dimension_numbers<[1], [0], [0], [1], [0, 0, 1, 1], [], []>} : vector<2x84xf32>, vector<84x10xf32>, vector<2x10xf32> -> vector<2x10xf32>
    %c0_15 = arith.constant 0 : index
    %c0_16 = arith.constant 0 : index
    %17 = vector.load %arg7[%c0_15, %c0_16] : memref<1x10xf32, #tpu.memory_space<vmem>>, vector<1x10xf32>
    %18 = vector.broadcast %17 : vector<1x10xf32> to vector<2x10xf32>
    %19 = arith.addf %16, %18 : vector<2x10xf32>
    %cst_17 = arith.constant dense<0xFF800000> : vector<2xf32>
    %20 = vector.multi_reduction <maximumf>, %19, %cst_17 [1] : vector<2x10xf32> to vector<2xf32>
    %21 = vector.shape_cast %20 : vector<2xf32> to vector<2x1xf32>
    %22 = vector.broadcast %21 : vector<2x1xf32> to vector<2x10xf32>
    %23 = arith.subf %19, %22 : vector<2x10xf32>
    %24 = math.exp %23 : vector<2x10xf32>
    %cst_18 = arith.constant dense<0.000000e+00> : vector<2xf32>
    %25 = vector.multi_reduction <add>, %24, %cst_18 [1] : vector<2x10xf32> to vector<2xf32>
    %26 = vector.shape_cast %25 : vector<2xf32> to vector<2x1xf32>
    %27 = tpu.reciprocal %26 {approx = true} : vector<2x1xf32> -> vector<2x1xf32>
    %28 = vector.broadcast %27 : vector<2x1xf32> to vector<2x10xf32>
    %29 = arith.mulf %24, %28 : vector<2x10xf32>
    %c0_19 = arith.constant 0 : index
    %c0_20 = arith.constant 0 : index
    %30 = vector.load %arg8[%c0_19, %c0_20] : memref<2x10xf32, #tpu.memory_space<vmem>>, vector<2x10xf32>
    tpu.vector_store %arg8[%c0_19, %c0_20], %29 {strides = array<i32>} : memref<2x10xf32, #tpu.memory_space<vmem>>, vector<2x10xf32>,
    return
  }
  func.func @transform_0(%arg0: i32) -> (i32, i32) {
    %c0_i32 = arith.constant 0 : i32
    %c0_i32_0 = arith.constant 0 : i32
    return %arg0, %c0_i32 : i32, i32
  }
  func.func @transform_1(%arg0: i32) -> (i32, i32) {
    %c0_i32 = arith.constant 0 : i32
    %c0_i32_0 = arith.constant 0 : i32
    %c0_i32_1 = arith.constant 0 : i32
    return %c0_i32, %c0_i32_0 : i32, i32
  }
  func.func @transform_2(%arg0: i32) -> (i32, i32) {
    %c0_i32 = arith.constant 0 : i32
    %c0_i32_0 = arith.constant 0 : i32
    %c0_i32_1 = arith.constant 0 : i32
    return %c0_i32, %c0_i32_0 : i32, i32
  }
  func.func @transform_3(%arg0: i32) -> (i32, i32) {
    %c0_i32 = arith.constant 0 : i32
    %c0_i32_0 = arith.constant 0 : i32
    %c0_i32_1 = arith.constant 0 : i32
    return %c0_i32, %c0_i32_0 : i32, i32
  }
  func.func @transform_4(%arg0: i32) -> (i32, i32) {
    %c0_i32 = arith.constant 0 : i32
    %c0_i32_0 = arith.constant 0 : i32
    %c0_i32_1 = arith.constant 0 : i32
    return %c0_i32, %c0_i32_0 : i32, i32
  }
  func.func @transform_5(%arg0: i32) -> (i32, i32) {
    %c0_i32 = arith.constant 0 : i32
    %c0_i32_0 = arith.constant 0 : i32
    %c0_i32_1 = arith.constant 0 : i32
    return %c0_i32, %c0_i32_0 : i32, i32
  }
  func.func @transform_6(%arg0: i32) -> (i32, i32) {
    %c0_i32 = arith.constant 0 : i32
    %c0_i32_0 = arith.constant 0 : i32
    %c0_i32_1 = arith.constant 0 : i32
    return %c0_i32, %c0_i32_0 : i32, i32
  }
  func.func @transform_7(%arg0: i32) -> (i32, i32) {
    %c0_i32 = arith.constant 0 : i32
    %c0_i32_0 = arith.constant 0 : i32
    return %arg0, %c0_i32 : i32, i32
  }
}

</mosaic_0001>

<bundles_post_ra>
// kernel: net_forward.5
= control target key start
LH: loop header
LB: loop body
LE: loop exit
PB: predicated region body
PF: predicated region fallthrough
CT: control target
= control target key end

     0   :  { %s686_s12 = smov 0   ;;  %s688_s13 = smov 0   ;;  %s870_s0 = inlined_call_operand.vmem [shape: f32[6,75], index: 0, kind: input, shape index: {}]   ;;  %s871_s1 = inlined_call_operand.vmem [shape: f32[6,1], index: 1, kind: input, shape index: {}]   ;;  %s872_s2 = inlined_call_operand.vmem [shape: f32[75,2048], index: 2, kind: input, shape index: {}]   ;;  %s873_s3 = inlined_call_operand.vmem [shape: f32[6,2048], index: 3, kind: output, shape index: {}]  }
   0x1   :  { %s690_s14 = smov 0  }
   0x2 LB: > { %s547_s15 = sadd.s32 4294967295, %s661_s14   ;;  %s703_s16 = sadd.s32 1, %s661_s14   ;;  %s661_s14 = sphi %s690_s14, %s876_s14   ;;  %s657_s13 = sphi %s688_s13, %s875_s13   ;;  %s653_s12 = sphi %s686_s12, %s874_s12  }
   0x3   : > { %s59_s17 = ssub.s32 %s661_s14, %s703_s16  ;;  %s62_s18 = sadd.s32 1, %s657_s13 }
   0x4   : > { %p60_p0 = scmp.eq.s32.totalorder %s59_s17, 0  ;;  %p69_p1 = scmp.ne.s32.totalorder %s657_s13, %s653_s12 }
   0x5   : > { %p70_p2 = scmp.eq.s32.totalorder %s661_s14, 0  ;;  %p550_p4 = scmp.ge.s32.totalorder %s661_s14, 4 }
   0x6   : > { %s712_s19 = scalar_select %p60_p0, %s657_s13, %s62_s18  }
   0x7   : > { %p71_p3 = por %p70_p2, %p69_p1  ;;  %127 = sbr.rel (%p550_p4) target bundleno = 39 (0x27), region = 24 }
   0xe   : > { %130 = sbr.rel (!%p71_p3) target bundleno = 39 (0x27), region = 28  ;;  %s132_s20 = sand.u32 (%p71_p3), 1, %s657_s13  }
   0xf   : > { %s564_s21 = sshll.u32 (%p71_p3), %s661_s14, 5  ;;  %s609_s22 = smul.u32 (%p71_p3), 320, %s132_s20 }
  0x10   : > { %s720_s25 = scalar_lea.vmem (%p71_p3), %s872_s2, %s564_s21 }
  0x11   : > { %v150_v0 = vld [vmem:[%s720_s25] sm:$0xff] (%p71_p3)  ;;  %v152_v1 = vld [vmem:[%s720_s25 + $0x8] sm:$0xff] (%p71_p3)  ;;  %v154_v2 = vld [vmem:[%s720_s25 + $0x10] sm:$0xff] (%p71_p3)  ;;  %s728_s26 = scalar_lea.vmem (%p71_p3), [#allocation2], %s609_s22 }
  0x12   : > { %v156_v3 = vld [vmem:[%s720_s25 + $0x18] sm:$0xff] (%p71_p3)  ;;  %v158_v4 = vld [vmem:[%s720_s25 + $0x80] sm:$0xff] (%p71_p3)  ;;  %v160_v5 = vld [vmem:[%s720_s25 + $0x88] sm:$0xff] (%p71_p3)  ;;  %151 = vst [vmem:[%s728_s26] sm:$0xff] (%p71_p3), %v150_v0 }
  0x13   : > { %153 = vst [vmem:[%s728_s26 + $0x8] sm:$0xff] (%p71_p3), %v152_v1  ;;  %155 = vst [vmem:[%s728_s26 + $0x10] sm:$0xff] (%p71_p3), %v154_v2  ;;  %v162_v6 = vld [vmem:[%s720_s25 + $0x90] sm:$0xff] (%p71_p3)  ;;  %v164_v7 = vld [vmem:[%s720_s25 + $0x98] sm:$0xff] (%p71_p3) }
  0x14   : > { %157 = vst [vmem:[%s728_s26 + $0x18] sm:$0xff] (%p71_p3), %v156_v3  ;;  %159 = vst [vmem:[%s728_s26 + $0x20] sm:$0xff] (%p71_p3), %v158_v4  ;;  %v166_v8 = vld [vmem:[%s720_s25 + $0x100] sm:$0xff] (%p71_p3)  ;;  %v168_v9 = vld [vmem:[%s720_s25 + $0x108] sm:$0xff] (%p71_p3) }
  0x15   : > { %161 = vst [vmem:[%s728_s26 + $0x28] sm:$0xff] %v160_v5  ;;  %163 = vst [vmem:[%s728_s26 + $0x30] sm:$0xff] %v162_v6  ;;  %v170_v10 = vld [vmem:[%s720_s25 + $0x110] sm:$0xff]  ;;  %v172_v11 = vld [vmem:[%s720_s25 + $0x118] sm:$0xff] }
  0x16   : > { %165 = vst [vmem:[%s728_s26 + $0x38] sm:$0xff] %v164_v7  ;;  %167 = vst [vmem:[%s728_s26 + $0x40] sm:$0xff] %v166_v8  ;;  %v174_v12 = vld [vmem:[%s720_s25 + $0x180] sm:$0xff]  ;;  %v176_v13 = vld [vmem:[%s720_s25 + $0x188] sm:$0xff] }
  0x17   : > { %169 = vst [vmem:[%s728_s26 + $0x48] sm:$0xff] %v168_v9  ;;  %171 = vst [vmem:[%s728_s26 + $0x50] sm:$0xff] %v170_v10  ;;  %v178_v14 = vld [vmem:[%s720_s25 + $0x190] sm:$0xff]  ;;  %v180_v15 = vld [vmem:[%s720_s25 + $0x198] sm:$0xff] }
  0x18   : > { %173 = vst [vmem:[%s728_s26 + $0x58] sm:$0xff] %v172_v11  ;;  %175 = vst [vmem:[%s728_s26 + $0x60] sm:$0xff] %v174_v12  ;;  %v182_v16 = vld [vmem:[%s720_s25 + $0x200] sm:$0xff]  ;;  %v184_v17 = vld [vmem:[%s720_s25 + $0x208] sm:$0xff] }
  0x19   : > { %177 = vst [vmem:[%s728_s26 + $0x68] sm:$0xff] %v176_v13  ;;  %179 = vst [vmem:[%s728_s26 + $0x70] sm:$0xff] %v178_v14  ;;  %v186_v18 = vld [vmem:[%s720_s25 + $0x210] sm:$0xff]  ;;  %v188_v19 = vld [vmem:[%s720_s25 + $0x218] sm:$0xff] }
  0x1a   : > { %181 = vst [vmem:[%s728_s26 + $0x78] sm:$0xff] %v180_v15  ;;  %183 = vst [vmem:[%s728_s26 + $0x80] sm:$0xff] %v182_v16  ;;  %v190_v20 = vld [vmem:[%s720_s25 + $0x280] sm:$0xff]  ;;  %v192_v21 = vld [vmem:[%s720_s25 + $0x288] sm:$0xff] }
  0x1b   : > { %185 = vst [vmem:[%s728_s26 + $0x88] sm:$0xff] %v184_v17  ;;  %187 = vst [vmem:[%s728_s26 + $0x90] sm:$0xff] %v186_v18  ;;  %v194_v22 = vld [vmem:[%s720_s25 + $0x290] sm:$0xff]  ;;  %v196_v23 = vld [vmem:[%s720_s25 + $0x298] sm:$0xff] }
  0x1c   : > { %189 = vst [vmem:[%s728_s26 + $0x98] sm:$0xff] %v188_v19  ;;  %191 = vst [vmem:[%s728_s26 + $0xa0] sm:$0xff] %v190_v20  ;;  %v198_v24 = vld [vmem:[%s720_s25 + $0x300] sm:$0xff]  ;;  %v200_v25 = vld [vmem:[%s720_s25 + $0x308] sm:$0xff] }
  0x1d   : > { %193 = vst [vmem:[%s728_s26 + $0xa8] sm:$0xff] %v192_v21  ;;  %195 = vst [vmem:[%s728_s26 + $0xb0] sm:$0xff] %v194_v22  ;;  %v202_v26 = vld [vmem:[%s720_s25 + $0x310] sm:$0xff]  ;;  %v204_v27 = vld [vmem:[%s720_s25 + $0x318] sm:$0xff] }
  0x1e   : > { %197 = vst [vmem:[%s728_s26 + $0xb8] sm:$0xff] %v196_v23  ;;  %199 = vst [vmem:[%s728_s26 + $0xc0] sm:$0xff] %v198_v24  ;;  %v206_v28 = vld [vmem:[%s720_s25 + $0x380] sm:$0xff]  ;;  %v208_v29 = vld [vmem:[%s720_s25 + $0x388] sm:$0xff] }
  0x1f   : > { %201 = vst [vmem:[%s728_s26 + $0xc8] sm:$0xff] %v200_v25  ;;  %203 = vst [vmem:[%s728_s26 + $0xd0] sm:$0xff] %v202_v26  ;;  %v210_v30 = vld [vmem:[%s720_s25 + $0x390] sm:$0xff]  ;;  %v212_v31 = vld [vmem:[%s720_s25 + $0x398] sm:$0xff] }
  0x20   : > { %205 = vst [vmem:[%s728_s26 + $0xd8] sm:$0xff] %v204_v27  ;;  %207 = vst [vmem:[%s728_s26 + $0xe0] sm:$0xff] %v206_v28  ;;  %v214_v32 = vld [vmem:[%s720_s25 + $0x400] sm:$0xff]  ;;  %v216_v33 = vld [vmem:[%s720_s25 + $0x408] sm:$0xff] }
  0x21   : > { %209 = vst [vmem:[%s728_s26 + $0xe8] sm:$0xff] %v208_v29  ;;  %211 = vst [vmem:[%s728_s26 + $0xf0] sm:$0xff] %v210_v30  ;;  %v218_v34 = vld [vmem:[%s720_s25 + $0x410] sm:$0xff]  ;;  %v220_v35 = vld [vmem:[%s720_s25 + $0x418] sm:$0xff] }
  0x22   : > { %213 = vst [vmem:[%s728_s26 + $0xf8] sm:$0xff] %v212_v31  ;;  %215 = vst [vmem:[%s728_s26 + $0x100] sm:$0xff] %v214_v32  ;;  %v222_v36 = vld [vmem:[%s720_s25 + $0x480] sm:$0xff]  ;;  %v224_v37 = vld [vmem:[%s720_s25 + $0x488] sm:$0xff] }
  0x23   : > { %217 = vst [vmem:[%s728_s26 + $0x108] sm:$0xff] %v216_v33  ;;  %219 = vst [vmem:[%s728_s26 + $0x110] sm:$0xff] %v218_v34  ;;  %v226_v38 = vld [vmem:[%s720_s25 + $0x490] sm:$0xff]  ;;  %v228_v39 = vld [vmem:[%s720_s25 + $0x498] sm:$0xff] }
  0x24   : > { %221 = vst [vmem:[%s728_s26 + $0x118] sm:$0xff] %v220_v35  ;;  %223 = vst [vmem:[%s728_s26 + $0x120] sm:$0xff] %v222_v36 }
  0x25   : > { %225 = vst [vmem:[%s728_s26 + $0x128] sm:$0xff] %v224_v37  ;;  %227 = vst [vmem:[%s728_s26 + $0x130] sm:$0xff] %v226_v38 }
  0x26   : > { %229 = vst [vmem:[%s728_s26 + $0x138] sm:$0xff] %v228_v39 }
  0x27 PF: > { %p553_p5 = scmp.ge.s32.totalorder %s661_s14, 1  ;;  %p234_p6 = scmp.lt.s32.totalorder %s661_s14, 5 }
  0x29   : > { %p235_p7 = pnand %p553_p5, %p234_p6 }
  0x2a   : > { %s241_s27 = sand.u32 (!%p235_p7), 1, %s653_s12   ;;  %v663_v40 = vmov (!%p235_p7), 0.0   ;;  %v312_v41 = vld [vmem:[%s871_s1] sm:$0x3f] (!%p235_p7)  ;;  %v664_v42 = vmov (!%p235_p7), 0   ;;  %vm322_vm0 = vcmask (!%p235_p7), 1042432  }
  0x2b   : > { %238 = sbr.rel (%p235_p7) target bundleno = 290 (0x122), region = 51  ;;  %399 = vmatprep.mubr.f32.mxu0 (!%p235_p7), %v663_v40  ;;  %470 = vmatprep.mubr.f32.mxu1 (!%p235_p7), %v663_v40  ;;  %vm665_vm1 = vmmov (!%p235_p7), 1   ;;  %v271_v39 = vld [vmem:[%s870_s0] sm:$0x3f] (!%p235_p7)  ;;  %vm318_vm3 = vcmask (!%p235_p7), 613376   ;;  %s554_s7 = sshll.u32 (!%p235_p7), %s547_s15, 2 }
  0x2c   : > { %s610_s28 = smul.u32 (!%p235_p7), 320, %s241_s27  ;;  %638 = vset.pattern.permute.xlu0 (!%p235_p7), %v664_v42  ;;  %vm582_vm2 = vmpackc.low (!%p235_p7), %vm322_vm0, %vm665_vm1  ;;  %p266_p8 = scmp.lt.s32.totalorder (!%p235_p7), %s554_s7, 15 }
  0x2d   : > { %315 = vperm.xlu0 (!%p235_p7), %638, %v312_v41  }
  0x2e   : > { %s810_s4 = scalar_lea.vmem (!%p235_p7), [#allocation2], %s610_s28 }
  0x2f   : > { %v273_v43 = vld [vmem:[%s810_s4 + $0x8] sm:$0xff] (!%p235_p7)  ;;  %v275_v45 = vld [vmem:[%s810_s4 + $0x18] sm:$0xff] (!%p235_p7)  ;;  %v272_v48 = vld [vmem:[%s810_s4] sm:$0xff] (!%p235_p7) }
  0x30   : > { %v277_v44 = vld [vmem:[%s810_s4 + $0x28] sm:$0xff] (!%p235_p7)  ;;  %v279_v47 = vld [vmem:[%s810_s4 + $0x38] sm:$0xff] (!%p235_p7)  ;;  %v276_v49 = vld [vmem:[%s810_s4 + $0x20] sm:$0xff] (!%p235_p7) }
  0x31   : > { %v565_v46 = vpack.c.bf16 (!%p235_p7), %v277_v44, %v273_v43  ;;  %v587_v50 = vpack.c.bf16 (!%p235_p7), %v279_v47, %v275_v45  ;;  %v567_v51 = vpack.c.bf16 (!%p235_p7), %v276_v49, %v272_v48  ;;  %v274_v52 = vld [vmem:[%s810_s4 + $0x10] sm:$0xff] (!%p235_p7)  ;;  %v281_v54 = vld [vmem:[%s810_s4 + $0x48] sm:$0xff] (!%p235_p7)  ;;  %v283_v57 = vld [vmem:[%s810_s4 + $0x58] sm:$0xff] (!%p235_p7) }
  0x32   : > { %v278_v53 = vld [vmem:[%s810_s4 + $0x30] sm:$0xff]  ;;  %v285_v56 = vld [vmem:[%s810_s4 + $0x68] sm:$0xff]  ;;  %v287_v58 = vld [vmem:[%s810_s4 + $0x78] sm:$0xff]  ;;  %s878_s7 = smov (!%p266_p8, %s554_s7), 15 }
  0x33   : > { %566 = vmatprep.subr.bf16.mxu0 %v565_v46  ;;  %v589_v55 = vpack.c.bf16 %v278_v53, %v274_v52  ;;  %588 = vmatprep.subr.bf16.mxu1 %v587_v50  ;;  %v569_v59 = vpack.c.bf16 %v285_v56, %v281_v54  ;;  %v591_v60 = vpack.c.bf16 %v287_v58, %v283_v57  ;;  %v280_v61 = vld [vmem:[%s810_s4 + $0x40] sm:$0xff]  ;;  %v282_v63 = vld [vmem:[%s810_s4 + $0x50] sm:$0xff]  ;;  %v289_v2 = vld [vmem:[%s810_s4 + $0x88] sm:$0xff]  ;;  %s555_s8 = sshll.u32 %s878_s7, 3 }
  0x34   : > { %568 = vmatpush1.bf16.msra.mxu0 %v567_v51  ;;  %v284_v62 = vld [vmem:[%s810_s4 + $0x60] sm:$0xff]  ;;  %v286_v1 = vld [vmem:[%s810_s4 + $0x70] sm:$0xff]  ;;  %v293_v3 = vld [vmem:[%s810_s4 + $0xa8] sm:$0xff]  ;;  %s269_s11 = scalar_lea.vmem %s873_s3, %s555_s8 }
  0x35   : > { %590 = vmatpush1.bf16.msra.mxu1 %v589_v55  ;;  %v571_v0 = vpack.c.bf16 %v284_v62, %v280_v61  ;;  %570 = vmatprep.subr.bf16.mxu0 %v569_v59  ;;  %v593_v4 = vpack.c.bf16 %v286_v1, %v282_v63  ;;  %v573_v5 = vpack.c.bf16 %v293_v3, %v289_v2  ;;  %v291_v6 = vld [vmem:[%s810_s4 + $0x98] sm:$0xff]  ;;  %v288_v8 = vld [vmem:[%s810_s4 + $0x80] sm:$0xff]  ;;  %v290_v11 = vld [vmem:[%s810_s4 + $0x90] sm:$0xff] }
  0x36   : > { %592 = vmatprep.subr.bf16.mxu1 %v591_v60  ;;  %v295_v7 = vld [vmem:[%s810_s4 + $0xb8] sm:$0xff]  ;;  %v292_v10 = vld [vmem:[%s810_s4 + $0xa0] sm:$0xff]  ;;  %v294_v12 = vld [vmem:[%s810_s4 + $0xb0] sm:$0xff] }
  0x37   : > { %v595_v9 = vpack.c.bf16 %v295_v7, %v291_v6  ;;  %v575_v13 = vpack.c.bf16 %v292_v10, %v288_v8  ;;  %v297_v14 = vld [vmem:[%s810_s4 + $0xc8] sm:$0xff]  ;;  %v299_v16 = vld [vmem:[%s810_s4 + $0xd8] sm:$0xff]  ;;  %v597_v17 = vpack.c.bf16 %v294_v12, %v290_v11  ;;  %v296_v20 = vld [vmem:[%s810_s4 + $0xc0] sm:$0xff] }
  0x38   : > { %572 = vmatpush1.bf16.msra.mxu0 %v571_v0  ;;  %v301_v15 = vld [vmem:[%s810_s4 + $0xe8] sm:$0xff]  ;;  %v303_v19 = vld [vmem:[%s810_s4 + $0xf8] sm:$0xff]  ;;  %v300_v21 = vld [vmem:[%s810_s4 + $0xe0] sm:$0xff] }
  0x39   : > { %594 = vmatpush1.bf16.msra.mxu1 %v593_v4  ;;  %574 = vmatprep.subr.bf16.mxu0 %v573_v5  ;;  %v577_v18 = vpack.c.bf16 %v301_v15, %v297_v14  ;;  %v599_v22 = vpack.c.bf16 %v303_v19, %v299_v16  ;;  %v298_v23 = vld [vmem:[%s810_s4 + $0xd0] sm:$0xff]  ;;  %v305_v25 = vld [vmem:[%s810_s4 + $0x108] sm:$0xff]  ;;  %v307_v27 = vld [vmem:[%s810_s4 + $0x118] sm:$0xff]  ;;  %v579_v29 = vpack.c.bf16 %v300_v21, %v296_v20 }
  0x3a   : > { %596 = vmatprep.subr.bf16.mxu1 %v595_v9  ;;  %v302_v24 = vld [vmem:[%s810_s4 + $0xf0] sm:$0xff]  ;;  %v309_v26 = vld [vmem:[%s810_s4 + $0x128] sm:$0x7]  ;;  %v311_v28 = vld [vmem:[%s810_s4 + $0x138] sm:$0x7] }
  0x3b   : > { %v601_v30 = vpack.c.bf16 %v302_v24, %v298_v23  ;;  %v581_v31 = vpack.c.bf16 %v309_v26, %v305_v25  ;;  %v304_v32 = vld [vmem:[%s810_s4 + $0x100] sm:$0xff]  ;;  %v603_v34 = vpack.c.bf16 %v311_v28, %v307_v27  ;;  %v306_v35 = vld [vmem:[%s810_s4 + $0x110] sm:$0xff] }
  0x3c   : > { %576 = vmatpush1.bf16.msra.mxu0 %v575_v13  ;;  %v308_v33 = vld [vmem:[%s810_s4 + $0x120] sm:$0x7]  ;;  %v310_v36 = vld [vmem:[%s810_s4 + $0x130] sm:$0x7] }
  0x3d   : > { %598 = vmatpush1.bf16.msra.mxu1 %v597_v17  ;;  %578 = vmatprep.subr.bf16.mxu0 %v577_v18  ;;  %v584_v37 = vpack.c.bf16 %v308_v33, %v304_v32  ;;  %v606_v38 = vpack.c.bf16 %v310_v36, %v306_v35 }
  0x3e   : > { %600 = vmatprep.subr.bf16.mxu1 %v599_v22 }
  0x40   : > { %580 = vmatpush1.bf16.msra.mxu0 %v579_v29 }
  0x41   : > { %602 = vmatpush1.bf16.msra.mxu1 %v601_v30  ;;  %583 = vmatprep.subr.msk.bf16.mxu0 %vm582_vm2, %v581_v31 }
  0x42   : > { %605 = vmatprep.subr.msk.bf16.mxu1 %vm582_vm2, %v603_v34 }
  0x44   : > { %586 = vmatpush1.bf16.msk.msra.mxu0 %vm582_vm2, %v584_v37 }
  0x45   : > { %608 = vmatpush1.bf16.msk.msra.mxu1 %vm582_vm2, %v606_v38 }
  0x47   : > { %558 = vmatmul.mubr.msk.f32.vlgmr.msra.gmra.mrb[0].mxu0 %vm318_vm3, %v271_v39 }
  0x48   : > { %561 = vmatmul.mubr.msk.f32.vlgmr.msra.gmra.mrb[0].mxu1 %vm318_vm3, %v271_v39 }
  0xac   : > { %v316_v40 = vpop.permute.xlu0 %315 }
 0x11a   : > { %v401_v41 = vpop.f32.mrb[0].mxu0 }
 0x11b   : > { %v402_v42 = vadd.f32 %v401_v41, %v316_v40  ;;  %v472_v43 = vpop.f32.mrb[0].mxu1  ;;  %v403_v44 = vpop.f32.mrb[1].mxu0 }
 0x11c   : > { %v473_v45 = vadd.f32 %v472_v43, %v316_v40  ;;  %v404_v46 = vadd.f32 %v403_v44, %v316_v40  ;;  %v474_v47 = vpop.f32.mrb[1].mxu1 }
 0x11d   : > { %v477_v48 = vmax.f32 %v402_v42, 0.0  ;;  %v475_v49 = vadd.f32 %v474_v47, %v316_v40 }
 0x11e   : > { %v479_v50 = vmax.f32 %v473_v45, 0.0  ;;  %v478_v51 = vmax.f32 %v404_v46, 0.0 }
 0x11f   : > { %481 = vst [vmem:[%s269_s11] sm:$0x3f] %v477_v48  ;;  %v480_v52 = vmax.f32 %v475_v49, 0.0 }
 0x120   : > { %483 = vst [vmem:[%s269_s11 + $0x10] sm:$0x3f] %v479_v50  ;;  %482 = vst [vmem:[%s269_s11 + $0x8] sm:$0x3f] %v478_v51 }
 0x121   : > { %484 = vst [vmem:[%s269_s11 + $0x18] sm:$0x3f] %v480_v52 }
 0x122 PF: > { %p10_p9 = scmp.ge.s32.totalorder %s703_s16, 6   ;;  %s874_s12 = smov %s657_s13 }
 0x123   : > { %s875_s13 = smov %s712_s19  ;;  %s876_s14 = smov %s703_s16 }
 0x124   :  { %12 = sbr.rel (!%p10_p9) target bundleno = 2 (0x2), region = 90 }

// kernel: net_forward.6
= control target key start
LH: loop header
LB: loop body
LE: loop exit
PB: predicated region body
PF: predicated region fallthrough
CT: control target
= control target key end

     0   :  { %vm42_vm0 = vcmask 62464   ;;  %s130_s0 = inlined_call_operand.vmem [shape: f32[4,6,392], index: 0, kind: input, shape index: {}]   ;;  %s131_s1 = inlined_call_operand.vmem [shape: f32[6,392], index: 1, kind: output, shape index: {}]  }
   0x1   :  { %v8_v0 = vld [vmem:[%s130_s0] sm:$0x3f]  ;;  %v9_v5 = vld [vmem:[%s130_s0 + $0x8] sm:$0x3f]  ;;  %v10_v11 = vld [vmem:[%s130_s0 + $0x10] sm:$0x3f] }
   0x2   :  { %v48_v1 = vld [vmem:[%s130_s0 + $0x20] sm:$0x3f]  ;;  %v49_v6 = vld [vmem:[%s130_s0 + $0x28] sm:$0x3f]  ;;  %v50_v13 = vld [vmem:[%s130_s0 + $0x30] sm:$0x3f] }
   0x3   :  { %v52_v2 = vld [vmem:[%s130_s0 + $0x40] sm:$0x3f]  ;;  %v17_v3 = vmax.f32 %v8_v0, %v48_v1  ;;  %v18_v8 = vmax.f32 %v9_v5, %v49_v6  ;;  %v53_v9 = vld [vmem:[%s130_s0 + $0x48] sm:$0x3f]  ;;  %v54_v14 = vld [vmem:[%s130_s0 + $0x50] sm:$0x3f]  ;;  %v19_v17 = vmax.f32 %v10_v11, %v50_v13 }
   0x4   :  { %v56_v4 = vld [vmem:[%s130_s0 + $0x60] sm:$0x3f]  ;;  %v57_v10 = vld [vmem:[%s130_s0 + $0x68] sm:$0x3f]  ;;  %v58_v15 = vld [vmem:[%s130_s0 + $0x70] sm:$0x3f] }
   0x5   :  { %v31_v7 = vmax.f32 %v52_v2, %v56_v4  ;;  %v32_v12 = vmax.f32 %v53_v9, %v57_v10  ;;  %v33_v18 = vmax.f32 %v54_v14, %v58_v15  ;;  %v11_v19 = vld [vmem:[%s130_s0 + $0x18] sm:$0x3f] }
   0x6   :  { %v51_v20 = vld [vmem:[%s130_s0 + $0x38] sm:$0x3f] }
   0x7   :  { %v35_v16 = vmax.f32 %v17_v3, %v31_v7  ;;  %v55_v21 = vld [vmem:[%s130_s0 + $0x58] sm:$0x3f]  ;;  %v36_v22 = vmax.f32 %v18_v8, %v32_v12  ;;  %v20_v23 = vmax.f32 %v11_v19, %v51_v20  ;;  %v37_v25 = vmax.f32 %v19_v17, %v33_v18 }
   0x8   :  { %v59_v24 = vld [vmem:[%s130_s0 + $0x78] sm:$0x3f] }
   0x9   :  { %39 = vst [vmem:[%s131_s1] sm:$0x3f] %v35_v16  ;;  %v34_v26 = vmax.f32 %v55_v21, %v59_v24  ;;  %40 = vst [vmem:[%s131_s1 + $0x8] sm:$0x3f] %v36_v22 }
   0xa   :  { %41 = vst [vmem:[%s131_s1 + $0x10] sm:$0x3f] %v37_v25 }
   0xb   :  { %v38_v27 = vmax.f32 %v20_v23, %v34_v26 }
   0xd   :  { %43 = vst.msk [vmem:[%s131_s1 + $0x18] sm:$0x3f] %vm42_vm0, %v38_v27 }

// kernel: net_forward.7
= control target key start
LH: loop header
LB: loop body
LE: loop exit
PB: predicated region body
PF: predicated region fallthrough
CT: control target
= control target key end

     0   :  { %v234_v3 = vmov 0   ;;  %vm68_vm0 = vcmask 179200   ;;  %vm75_vm1 = vcmask 1045504   ;;  %vm164_vm2 = vcmask 588800   ;;  %s399_s2 = inlined_call_operand.vmem [shape: f32[150,200], index: 2, kind: input, shape index: {}]   ;;  %s400_s0 = inlined_call_operand.vmem [shape: f32[16,150], index: 0, kind: input, shape index: {}]   ;;  %s401_s1 = inlined_call_operand.vmem [shape: f32[16,1], index: 1, kind: input, shape index: {}]   ;;  %s402_s3 = inlined_call_operand.vmem [shape: f32[16,200], index: 3, kind: output, shape index: {}]  }
   0x1   :  { %v19_v0 = vld [vmem:[%s399_s2 + $0x8] sm:$0xff]  ;;  %v21_v1 = vld [vmem:[%s399_s2 + $0x18] sm:$0xff]  ;;  %v18_v2 = vld [vmem:[%s399_s2] sm:$0xff]  ;;  %233 = vset.pattern.permute.xlu0 %v234_v3 }
   0x2   :  { %v176_v4 = vpack.c.bf16 %v21_v1, %v19_v0  ;;  %v20_v5 = vld [vmem:[%s399_s2 + $0x10] sm:$0xff]  ;;  %v23_v6 = vld [vmem:[%s399_s2 + $0x28] sm:$0xff]  ;;  %v25_v7 = vld [vmem:[%s399_s2 + $0x38] sm:$0xff] }
   0x3   :  { %v178_v8 = vpack.c.bf16 %v20_v5, %v18_v2  ;;  %v180_v9 = vpack.c.bf16 %v25_v7, %v23_v6  ;;  %v22_v10 = vld [vmem:[%s399_s2 + $0x20] sm:$0xff]  ;;  %v24_v11 = vld [vmem:[%s399_s2 + $0x30] sm:$0xff]  ;;  %v27_v12 = vld [vmem:[%s399_s2 + $0x48] sm:$0xff] }
   0x4   :  { %177 = vmatprep.subr.bf16.mxu0 %v176_v4  ;;  %212 = vmatprep.subr.bf16.mxu1 %v176_v4  ;;  %v29_v13 = vld [vmem:[%s399_s2 + $0x58] sm:$0xff]  ;;  %v182_v14 = vpack.c.bf16 %v24_v11, %v22_v10  ;;  %v26_v16 = vld [vmem:[%s399_s2 + $0x40] sm:$0xff]  ;;  %v28_v17 = vld [vmem:[%s399_s2 + $0x50] sm:$0xff] }
   0x5   :  { %179 = vmatpush1.bf16.msra.mxu0 %v178_v8  ;;  %222 = vmatpush1.bf16.msra.mxu1 %v178_v8  ;;  %v184_v15 = vpack.c.bf16 %v29_v13, %v27_v12  ;;  %v31_v18 = vld [vmem:[%s399_s2 + $0x68] sm:$0xff]  ;;  %v33_v19 = vld [vmem:[%s399_s2 + $0x78] sm:$0xff]  ;;  %v186_v20 = vpack.c.bf16 %v28_v17, %v26_v16  ;;  %v30_v22 = vld [vmem:[%s399_s2 + $0x60] sm:$0xff] }
   0x6   :  { %181 = vmatprep.subr.bf16.mxu0 %v180_v9  ;;  %213 = vmatprep.subr.bf16.mxu1 %v180_v9  ;;  %v188_v21 = vpack.c.bf16 %v33_v19, %v31_v18  ;;  %v32_v23 = vld [vmem:[%s399_s2 + $0x70] sm:$0xff]  ;;  %v35_v24 = vld [vmem:[%s399_s2 + $0x88] sm:$0xff]  ;;  %v37_v25 = vld [vmem:[%s399_s2 + $0x98] sm:$0xff] }
   0x7   :  { %v190_v26 = vpack.c.bf16 %v32_v23, %v30_v22  ;;  %v15_v27 = vld [vmem:[%s400_s0 + $0x8] sm:$0xff]  ;;  %v192_v28 = vpack.c.bf16 %v37_v25, %v35_v24  ;;  %v34_v29 = vld [vmem:[%s399_s2 + $0x80] sm:$0xff]  ;;  %v36_v30 = vld [vmem:[%s399_s2 + $0x90] sm:$0xff] }
   0x8   :  { %v17_v31 = vld [vmem:[%s400_s0 + $0x18] sm:$0xff]  ;;  %v39_v32 = vld [vmem:[%s399_s2 + $0xa8] sm:$0xff]  ;;  %174 = vmatprep.mubr.msk.f32.mxu0 %vm68_vm0, %v15_v27  ;;  %v56_v34 = vld [vmem:[%s401_s1] sm:$0xff]  ;;  %v194_v35 = vpack.c.bf16 %v36_v30, %v34_v29 }
   0x9   :  { %183 = vmatpush1.bf16.msra.mxu0 %v182_v14  ;;  %223 = vmatpush1.bf16.msra.mxu1 %v182_v14  ;;  %v41_v33 = vld [vmem:[%s399_s2 + $0xb8] sm:$0xff]  ;;  %v57_v36 = vld [vmem:[%s401_s1 + $0x8] sm:$0xff]  ;;  %v38_v38 = vld [vmem:[%s399_s2 + $0xa0] sm:$0xff] }
   0xa   :  { %185 = vmatprep.subr.bf16.mxu0 %v184_v15  ;;  %214 = vmatprep.subr.bf16.mxu1 %v184_v15  ;;  %v196_v37 = vpack.c.bf16 %v41_v33, %v39_v32  ;;  %v40_v39 = vld [vmem:[%s399_s2 + $0xb0] sm:$0xff]  ;;  %v43_v40 = vld [vmem:[%s399_s2 + $0xc8] sm:$0xff]  ;;  %v45_v41 = vld [vmem:[%s399_s2 + $0xd8] sm:$0xff] }
   0xb   :  { %175 = vmatprep.mubr.msk.f32.mxu1 %vm68_vm0, %v17_v31  ;;  %60 = vperm.xlu0 %233, %v56_v34   ;;  %v198_v42 = vpack.c.bf16 %v40_v39, %v38_v38  ;;  %v200_v43 = vpack.c.bf16 %v45_v41, %v43_v40  ;;  %v42_v44 = vld [vmem:[%s399_s2 + $0xc0] sm:$0xff]  ;;  %v44_v45 = vld [vmem:[%s399_s2 + $0xd0] sm:$0xff]  ;;  %v47_v46 = vld [vmem:[%s399_s2 + $0xe8] sm:$0xff] }
   0xc   :  { %v49_v47 = vld [vmem:[%s399_s2 + $0xf8] sm:$0xff]  ;;  %v202_v48 = vpack.c.bf16 %v44_v45, %v42_v44  ;;  %v46_v50 = vld [vmem:[%s399_s2 + $0xe0] sm:$0xff]  ;;  %v48_v51 = vld [vmem:[%s399_s2 + $0xf0] sm:$0xff] }
   0xd   :  { %187 = vmatpush1.bf16.msra.mxu0 %v186_v20  ;;  %224 = vmatpush1.bf16.msra.mxu1 %v186_v20  ;;  %v204_v49 = vpack.c.bf16 %v49_v47, %v47_v46  ;;  %v51_v52 = vld [vmem:[%s399_s2 + $0x108] sm:$0xff]  ;;  %v53_v53 = vld [vmem:[%s399_s2 + $0x118] sm:$0xff]  ;;  %v206_v54 = vpack.c.bf16 %v48_v51, %v46_v50  ;;  %v50_v56 = vld [vmem:[%s399_s2 + $0x100] sm:$0xff] }
   0xe   :  { %189 = vmatprep.subr.bf16.mxu0 %v188_v21  ;;  %215 = vmatprep.subr.bf16.mxu1 %v188_v21  ;;  %v208_v55 = vpack.c.bf16 %v53_v53, %v51_v52  ;;  %v52_v57 = vld [vmem:[%s399_s2 + $0x110] sm:$0xff]  ;;  %v55_v59 = vld [vmem:[%s399_s2 + $0x128] sm:$0x3f]  ;;  %v54_v60 = vld [vmem:[%s399_s2 + $0x120] sm:$0x3f] }
   0xf   :  { %65 = vperm.xlu0 %233, %v57_v36   ;;  %v210_v58 = vpack.c.bf16 %v52_v57, %v50_v56  ;;  %v14_v61 = vld [vmem:[%s400_s0] sm:$0xff]  ;;  %v16_v62 = vld [vmem:[%s400_s0 + $0x10] sm:$0xff] }
  0x11   :  { %191 = vmatpush1.bf16.msra.mxu0 %v190_v26  ;;  %225 = vmatpush1.bf16.msra.mxu1 %v190_v26 }
  0x12   :  { %193 = vmatprep.subr.bf16.mxu0 %v192_v28  ;;  %216 = vmatprep.subr.bf16.mxu1 %v192_v28 }
  0x15   :  { %195 = vmatpush1.bf16.msra.mxu0 %v194_v35  ;;  %226 = vmatpush1.bf16.msra.mxu1 %v194_v35 }
  0x16   :  { %197 = vmatprep.subr.bf16.mxu0 %v196_v37  ;;  %217 = vmatprep.subr.bf16.mxu1 %v196_v37 }
  0x19   :  { %199 = vmatpush1.bf16.msra.mxu0 %v198_v42  ;;  %227 = vmatpush1.bf16.msra.mxu1 %v198_v42 }
  0x1a   :  { %201 = vmatprep.subr.bf16.mxu0 %v200_v43  ;;  %218 = vmatprep.subr.bf16.mxu1 %v200_v43 }
  0x1d   :  { %203 = vmatpush1.bf16.msra.mxu0 %v202_v48  ;;  %228 = vmatpush1.bf16.msra.mxu1 %v202_v48 }
  0x1e   :  { %205 = vmatprep.subr.bf16.mxu0 %v204_v49  ;;  %219 = vmatprep.subr.bf16.mxu1 %v204_v49 }
  0x21   :  { %207 = vmatpush1.bf16.msra.mxu0 %v206_v54  ;;  %229 = vmatpush1.bf16.msra.mxu1 %v206_v54 }
  0x22   :  { %209 = vmatprep.subr.bf16.mxu0 %v208_v55  ;;  %220 = vmatprep.subr.bf16.mxu1 %v208_v55 }
  0x25   :  { %211 = vmatpush1.bf16.msra.mxu0 %v210_v58  ;;  %230 = vmatpush1.bf16.msra.mxu1 %v210_v58 }
  0x26   :  { %172 = vmatprep.subr.msk.mxu0 %vm75_vm1, %v55_v59  ;;  %221 = vmatprep.subr.msk.mxu1 %vm75_vm1, %v55_v59 }
  0x29   :  { %173 = vmatpush1.msk.msra.mxu0 %vm75_vm1, %v54_v60  ;;  %231 = vmatpush1.msk.msra.mxu1 %vm75_vm1, %v54_v60 }
  0x2a   :  { %147 = vmatmul.mubr.f32.vlgmr.msra.gmra.mrb[0].mxu0 %v14_v61  ;;  %153 = vmatmul.mubr.f32.vlgmr.msra.gmra.mrb[0].mxu1 %v16_v62 }
  0x8a   :  { %v61_v63 = vpop.permute.xlu0 %60 }
  0x8e   :  { %v66_v0 = vpop.permute.xlu0 %65 }
  0xfd   :  { %v148_v1 = vpop.f32.mrb[0].mxu0  ;;  %v154_v2 = vpop.f32.mrb[0].mxu1 }
  0xfe   :  { %v149_v3 = vadd.f32 %v148_v1, %v61_v63  ;;  %v155_v4 = vadd.f32 %v154_v2, %v66_v0  ;;  %v150_v5 = vpop.f32.mrb[1].mxu0  ;;  %v156_v6 = vpop.f32.mrb[1].mxu1 }
  0xff   :  { %v151_v7 = vadd.f32 %v150_v5, %v61_v63  ;;  %v157_v8 = vadd.f32 %v156_v6, %v66_v0 }
 0x100   :  { %v159_v9 = vmax.f32 %v149_v3, 0.0  ;;  %v161_v10 = vmax.f32 %v155_v4, 0.0 }
 0x101   :  { %v160_v11 = vmax.f32 %v151_v7, 0.0  ;;  %v162_v12 = vmax.f32 %v157_v8, 0.0 }
 0x102   :  { %163 = vst [vmem:[%s402_s3] sm:$0xff] %v159_v9  ;;  %166 = vst [vmem:[%s402_s3 + $0x10] sm:$0xff] %v161_v10 }
 0x103   :  { %165 = vst.msk [vmem:[%s402_s3 + $0x8] sm:$0xff] %vm164_vm2, %v160_v11  ;;  %167 = vst.msk [vmem:[%s402_s3 + $0x18] sm:$0xff] %vm164_vm2, %v162_v12 }

// kernel: net_forward.8
= control target key start
LH: loop header
LB: loop body
LE: loop exit
PB: predicated region body
PF: predicated region fallthrough
CT: control target
= control target key end

     0   :  { %vm25_vm0 = vcmask 408576   ;;  %s78_s0 = inlined_call_operand.vmem [shape: f32[4,16,50], index: 0, kind: input, shape index: {}]   ;;  %s79_s1 = inlined_call_operand.vmem [shape: f32[16,50], index: 1, kind: output, shape index: {}]  }
   0x1   :  { %v8_v0 = vld [vmem:[%s78_s0] sm:$0xff]  ;;  %v32_v1 = vld [vmem:[%s78_s0 + $0x10] sm:$0xff]  ;;  %v9_v5 = vld [vmem:[%s78_s0 + $0x8] sm:$0xff] }
   0x2   :  { %v34_v2 = vld [vmem:[%s78_s0 + $0x20] sm:$0xff]  ;;  %v13_v3 = vmax.f32 %v8_v0, %v32_v1  ;;  %v36_v4 = vld [vmem:[%s78_s0 + $0x30] sm:$0xff]  ;;  %v33_v6 = vld [vmem:[%s78_s0 + $0x18] sm:$0xff] }
   0x3   :  { %v21_v7 = vmax.f32 %v34_v2, %v36_v4  ;;  %v14_v8 = vmax.f32 %v9_v5, %v33_v6  ;;  %v35_v9 = vld [vmem:[%s78_s0 + $0x28] sm:$0xff]  ;;  %v37_v10 = vld [vmem:[%s78_s0 + $0x38] sm:$0xff] }
   0x4   :  { %v22_v11 = vmax.f32 %v35_v9, %v37_v10 }
   0x5   :  { %v23_v12 = vmax.f32 %v13_v3, %v21_v7 }
   0x6   :  { %v24_v13 = vmax.f32 %v14_v8, %v22_v11 }
   0x7   :  { %26 = vst.msk [vmem:[%s79_s1] sm:$0xff] %vm25_vm0, %v23_v12 }
   0x8   :  { %27 = vst.msk [vmem:[%s79_s1 + $0x8] sm:$0xff] %vm25_vm0, %v24_v13 }

// kernel: net_forward.9
= control target key start
LH: loop header
LB: loop body
LE: loop exit
PB: predicated region body
PF: predicated region fallthrough
CT: control target
= control target key end

     0   :  { %v727_v4 = vmov 0.0|0.0   ;;  %v728_v26 = vmov 1983009808   ;;  %v90_v28 = vlaneseq  ;;  %vm106_vm0 = vcmask 130048   ;;  %s1048_s0 = inlined_call_operand.vmem [shape: f32[2,400], index: 0, kind: input, shape index: {}]   ;;  %s1049_s1 = inlined_call_operand.vmem [shape: f32[400,120], index: 1, kind: input, shape index: {}]   ;;  %s1050_s2 = inlined_call_operand.vmem [shape: f32[1,120], index: 2, kind: input, shape index: {}]   ;;  %s1051_s3 = inlined_call_operand.vmem [shape: f32[120,84], index: 3, kind: input, shape index: {}]   ;;  %s1052_s4 = inlined_call_operand.vmem [shape: f32[1,84], index: 4, kind: input, shape index: {}]   ;;  %s1053_s5 = inlined_call_operand.vmem [shape: f32[84,10], index: 5, kind: input, shape index: {}]   ;;  %s1054_s6 = inlined_call_operand.vmem [shape: f32[1,10], index: 6, kind: input, shape index: {}]   ;;  %s1055_s7 = inlined_call_operand.hbm [shape: f32[2,10], index: 7, kind: output, shape index: {}]  }
   0x1   :  { %v44_v0 = vld [vmem:[%s1049_s1 + $0x80] sm:$0xff]  ;;  %v45_v1 = vld [vmem:[%s1049_s1 + $0x88] sm:$0xff]  ;;  %630 = vmatprep.subr.bf16.mxu1 %v727_v4  ;;  %v46_v10 = vld [vmem:[%s1049_s1 + $0x90] sm:$0xff]  ;;  %v88_v27 = vunpack.c.l.s4 %v728_v26 }
   0x2   :  { %v28_v2 = vld [vmem:[%s1049_s1] sm:$0xff]  ;;  %v598_v3 = vpack.c.bf16 %v45_v1, %v44_v0  ;;  %v29_v5 = vld [vmem:[%s1049_s1 + $0x8] sm:$0xff]  ;;  %v47_v11 = vld [vmem:[%s1049_s1 + $0x98] sm:$0xff]  ;;  %v91_v39 = vshrl.u32 %v90_v28, 7 }
   0x3   :  { %v60_v6 = vld [vmem:[%s1049_s1 + $0x100] sm:$0xff]  ;;  %v61_v7 = vld [vmem:[%s1049_s1 + $0x108] sm:$0xff]  ;;  %v600_v8 = vpack.c.bf16 %v29_v5, %v28_v2  ;;  %v30_v12 = vld [vmem:[%s1049_s1 + $0x10] sm:$0xff]  ;;  %v602_v13 = vpack.c.bf16 %v47_v11, %v46_v10  ;;  %v89_v38 = vunpack.c.0.s8 %v88_v27 }
   0x4   :  { %v631_v9 = vpack.c.bf16 %v61_v7, %v60_v6  ;;  %599 = vmatprep.subr.bf16.mxu0 %v598_v3  ;;  %v31_v14 = vld [vmem:[%s1049_s1 + $0x18] sm:$0xff]  ;;  %v62_v15 = vld [vmem:[%s1049_s1 + $0x110] sm:$0xff]  ;;  %v48_v19 = vld [vmem:[%s1049_s1 + $0xa0] sm:$0xff] }
   0x5   :  { %v63_v16 = vld [vmem:[%s1049_s1 + $0x118] sm:$0xff]  ;;  %601 = vmatpush3.bf16.msra.mxu0 %v600_v8  ;;  %v604_v17 = vpack.c.bf16 %v31_v14, %v30_v12  ;;  %v49_v20 = vld [vmem:[%s1049_s1 + $0xa8] sm:$0xff]  ;;  %v32_v21 = vld [vmem:[%s1049_s1 + $0x20] sm:$0xff]  ;;  %v92_v49 = vsub.s32 %v89_v38, %v91_v39 }
   0x6   :  { %632 = vmatpush1.bf16.msra.mxu1 %v631_v9  ;;  %v634_v18 = vpack.c.bf16 %v63_v16, %v62_v15  ;;  %603 = vmatprep.subr.bf16.mxu0 %v602_v13  ;;  %v606_v22 = vpack.c.bf16 %v49_v20, %v48_v19  ;;  %v33_v23 = vld [vmem:[%s1049_s1 + $0x28] sm:$0xff]  ;;  %v64_v24 = vld [vmem:[%s1049_s1 + $0x120] sm:$0xff]  ;;  %v50_v29 = vld [vmem:[%s1049_s1 + $0xb0] sm:$0xff] }
   0x7   :  { %633 = vmatprep.subr.bf16.mxu1 %v727_v4  ;;  %v65_v25 = vld [vmem:[%s1049_s1 + $0x128] sm:$0xff]  ;;  %v51_v30 = vld [vmem:[%s1049_s1 + $0xb8] sm:$0xff]  ;;  %v608_v31 = vpack.c.bf16 %v33_v23, %v32_v21  ;;  %v34_v33 = vld [vmem:[%s1049_s1 + $0x30] sm:$0xff] }
   0x8   :  { %v637_v32 = vpack.c.bf16 %v65_v25, %v64_v24  ;;  %v610_v34 = vpack.c.bf16 %v51_v30, %v50_v29  ;;  %v35_v35 = vld [vmem:[%s1049_s1 + $0x38] sm:$0xff]  ;;  %v66_v36 = vld [vmem:[%s1049_s1 + $0x130] sm:$0xff]  ;;  %v52_v40 = vld [vmem:[%s1049_s1 + $0xc0] sm:$0xff] }
   0x9   :  { %605 = vmatpush3.bf16.msra.mxu0 %v604_v17  ;;  %v67_v37 = vld [vmem:[%s1049_s1 + $0x138] sm:$0xff]  ;;  %v53_v41 = vld [vmem:[%s1049_s1 + $0xc8] sm:$0xff]  ;;  %v612_v42 = vpack.c.bf16 %v35_v35, %v34_v33  ;;  %v36_v44 = vld [vmem:[%s1049_s1 + $0x40] sm:$0xff] }
   0xa   :  { %635 = vmatpush1.bf16.msra.mxu1 %v634_v18  ;;  %607 = vmatprep.subr.bf16.mxu0 %v606_v22  ;;  %v640_v43 = vpack.c.bf16 %v67_v37, %v66_v36  ;;  %v614_v45 = vpack.c.bf16 %v53_v41, %v52_v40  ;;  %v37_v46 = vld [vmem:[%s1049_s1 + $0x48] sm:$0xff]  ;;  %v68_v47 = vld [vmem:[%s1049_s1 + $0x140] sm:$0xff]  ;;  %v54_v50 = vld [vmem:[%s1049_s1 + $0xd0] sm:$0xff] }
   0xb   :  { %636 = vmatprep.subr.bf16.mxu1 %v727_v4  ;;  %v69_v48 = vld [vmem:[%s1049_s1 + $0x148] sm:$0xff]  ;;  %v55_v51 = vld [vmem:[%s1049_s1 + $0xd8] sm:$0xff]  ;;  %v616_v52 = vpack.c.bf16 %v37_v46, %v36_v44  ;;  %v38_v54 = vld [vmem:[%s1049_s1 + $0x50] sm:$0xff] }
   0xc   :  { %v643_v53 = vpack.c.bf16 %v69_v48, %v68_v47  ;;  %v27_v55 = vld [vmem:[%s1048_s0] sm:$0xff]  ;;  %v618_v56 = vpack.c.bf16 %v55_v51, %v54_v50  ;;  %v39_v57 = vld [vmem:[%s1049_s1 + $0x58] sm:$0xff]  ;;  %v70_v58 = vld [vmem:[%s1049_s1 + $0x150] sm:$0xff] }
   0xd   :  { %609 = vmatpush3.bf16.msra.mxu0 %v608_v31  ;;  %v71_v59 = vld [vmem:[%s1049_s1 + $0x158] sm:$0xff]  ;;  %v86_v60 = vcombine.high %v27_v55, %v27_v55  ;;  %v93_v61 = vrot.slane %v27_v55, %v92_v49  ;;  %v56_v62 = vld [vmem:[%s1049_s1 + $0xe0] sm:$0xff]  ;;  %v57_v63 = vld [vmem:[%s1049_s1 + $0xe8] sm:$0xff]  ;;  %v620_v2 = vpack.c.bf16 %v39_v57, %v38_v54 }
   0xe   :  { %638 = vmatpush1.bf16.msra.mxu1 %v637_v32  ;;  %611 = vmatprep.subr.bf16.mxu0 %v610_v34  ;;  %v646_v3 = vpack.c.bf16 %v71_v59, %v70_v58  ;;  %v40_v5 = vld [vmem:[%s1049_s1 + $0x60] sm:$0xff] }
   0xf   :  { %639 = vmatprep.subr.bf16.mxu1 %v727_v4  ;;  %v101_v0 = vcombine.high %v93_v61, %v93_v61  ;;  %v100_v1 = vrot.slane %v86_v60, %v92_v49 }
  0x11   :  { %613 = vmatpush3.bf16.msra.mxu0 %v612_v42 }
  0x12   :  { %641 = vmatpush1.bf16.msra.mxu1 %v640_v43  ;;  %615 = vmatprep.subr.bf16.mxu0 %v614_v45 }
  0x13   :  { %642 = vmatprep.subr.bf16.mxu1 %v727_v4 }
  0x15   :  { %617 = vmatpush3.bf16.msra.mxu0 %v616_v52 }
  0x16   :  { %644 = vmatpush1.bf16.msra.mxu1 %v643_v53 }
  0x17   :  { %12 = vsyncpa [#allocation3], 0  ;;  %619 = vmatprep.subr.bf16.mxu0 %v618_v56  ;;  %645 = vmatprep.subr.bf16.mxu1 %v727_v4  ;;  %v622_v6 = vpack.c.bf16 %v57_v63, %v56_v62  ;;  %v41_v7 = vld [vmem:[%s1049_s1 + $0x68] sm:$0xff]  ;;  %v72_v8 = vld [vmem:[%s1049_s1 + $0x160] sm:$0xff]  ;;  %v102_v10 = vcombine.high %v100_v1, %v100_v1  ;;  %v729_v46 = vmov 0.0   ;;  %vm730_vm1 = vmmov 0  }
  0x18   :  { %v73_v9 = vld [vmem:[%s1049_s1 + $0x168] sm:$0xff]  ;;  %v58_v11 = vld [vmem:[%s1049_s1 + $0xf0] sm:$0xff]  ;;  %v59_v12 = vld [vmem:[%s1049_s1 + $0xf8] sm:$0xff]  ;;  %173 = vmatprep.mubr.f32.mxu0 %v101_v0  ;;  %v624_v13 = vpack.c.bf16 %v41_v7, %v40_v5  ;;  %vm272_vm2 = vcmask 982016   ;;  %vm369_vm3 = vcmask 1043456   ;;  %vm365_vm4 = vcmask 687104  }
  0x19   :  { %471 = vmatprep.mubr.msk.f32.mxu1 %vm106_vm0, %v102_v10  ;;  %621 = vmatpush3.bf16.msra.mxu0 %v620_v2  ;;  %v649_v14 = vpack.c.bf16 %v73_v9, %v72_v8  ;;  %v42_v15 = vld [vmem:[%s1049_s1 + $0x70] sm:$0xff]  ;;  %v626_v16 = vpack.c.bf16 %v59_v12, %v58_v11  ;;  %v43_v17 = vld [vmem:[%s1049_s1 + $0x78] sm:$0xff]  ;;  %v76_v22 = vld [vmem:[%s1049_s1 + $0x180] sm:$0xff]  ;;  %vm443_vm5 = vcmask 74752  }
  0x1a   :  { %647 = vmatpush1.bf16.msra.mxu1 %v646_v3  ;;  %623 = vmatprep.subr.bf16.mxu0 %v622_v6  ;;  %v74_v18 = vld [vmem:[%s1049_s1 + $0x170] sm:$0xff]  ;;  %v75_v19 = vld [vmem:[%s1049_s1 + $0x178] sm:$0xff]  ;;  %v628_v20 = vpack.c.bf16 %v43_v17, %v42_v15  ;;  %v77_v23 = vld [vmem:[%s1049_s1 + $0x188] sm:$0xff] }
  0x1b   :  { %648 = vmatprep.subr.bf16.mxu1 %v727_v4  ;;  %v652_v21 = vpack.c.bf16 %v75_v19, %v74_v18  ;;  %v250_v24 = vld [vmem:[%s1051_s3] sm:$0xff]  ;;  %v251_v25 = vld [vmem:[%s1051_s3 + $0x8] sm:$0xff]  ;;  %v655_v26 = vpack.c.bf16 %v77_v23, %v76_v22  ;;  %v252_v28 = vld [vmem:[%s1051_s3 + $0x10] sm:$0xff] }
  0x1c   :  { %v658_v27 = vpack.c.bf16 %v251_v25, %v250_v24  ;;  %v253_v29 = vld [vmem:[%s1051_s3 + $0x18] sm:$0xff]  ;;  %v254_v31 = vld [vmem:[%s1051_s3 + $0x20] sm:$0xff]  ;;  %v255_v32 = vld [vmem:[%s1051_s3 + $0x28] sm:$0xff] }
  0x1d   :  { %625 = vmatpush3.bf16.msra.mxu0 %v624_v13  ;;  %v661_v30 = vpack.c.bf16 %v253_v29, %v252_v28  ;;  %v664_v33 = vpack.c.bf16 %v255_v32, %v254_v31  ;;  %v256_v34 = vld [vmem:[%s1051_s3 + $0x30] sm:$0xff]  ;;  %v257_v35 = vld [vmem:[%s1051_s3 + $0x38] sm:$0xff]  ;;  %v258_v37 = vld [vmem:[%s1051_s3 + $0x40] sm:$0xff] }
  0x1e   :  { %650 = vmatpush1.bf16.msra.mxu1 %v649_v14  ;;  %627 = vmatprep.subr.bf16.mxu0 %v626_v16  ;;  %v667_v36 = vpack.c.bf16 %v257_v35, %v256_v34  ;;  %v259_v38 = vld [vmem:[%s1051_s3 + $0x48] sm:$0xff]  ;;  %v260_v40 = vld [vmem:[%s1051_s3 + $0x50] sm:$0xff]  ;;  %v261_v41 = vld [vmem:[%s1051_s3 + $0x58] sm:$0xff] }
  0x1f   :  { %651 = vmatprep.subr.bf16.mxu1 %v727_v4  ;;  %v670_v39 = vpack.c.bf16 %v259_v38, %v258_v37  ;;  %v673_v42 = vpack.c.bf16 %v261_v41, %v260_v40  ;;  %v262_v43 = vld [vmem:[%s1051_s3 + $0x60] sm:$0xff]  ;;  %v263_v44 = vld [vmem:[%s1051_s3 + $0x68] sm:$0xff]  ;;  %v264_v47 = vld [vmem:[%s1051_s3 + $0x70] sm:$0xff] }
  0x20   :  { %v676_v45 = vpack.c.bf16 %v263_v44, %v262_v43  ;;  %v347_v48 = vld [vmem:[%s1053_s5] sm:$0xff]  ;;  %v348_v49 = vld [vmem:[%s1053_s5 + $0x8] sm:$0xff]  ;;  %v349_v50 = vld [vmem:[%s1053_s5 + $0x10] sm:$0xff] }
  0x21   :  { %629 = vmatpush3.bf16.msra.mxu0 %v628_v20  ;;  %v679_v51 = vpack.c.bf16 %v348_v49, %v347_v48  ;;  %v350_v52 = vld [vmem:[%s1053_s5 + $0x18] sm:$0xff]  ;;  %v351_v54 = vld [vmem:[%s1053_s5 + $0x20] sm:$0xff]  ;;  %v352_v55 = vld [vmem:[%s1053_s5 + $0x28] sm:$0xff] }
  0x22   :  { %653 = vmatpush1.bf16.msra.mxu1 %v652_v21  ;;  %657 = vmatprep.subr.bf16.mxu0 %v727_v4  ;;  %v682_v53 = vpack.c.bf16 %v350_v52, %v349_v50  ;;  %v685_v56 = vpack.c.bf16 %v352_v55, %v351_v54  ;;  %v353_v57 = vld [vmem:[%s1053_s5 + $0x30] sm:$0xff]  ;;  %v354_v58 = vld [vmem:[%s1053_s5 + $0x38] sm:$0xff]  ;;  %v470_v62 = vld [vmem:[%s1050_s2] ss:$0 sm:$0xff] }
  0x23   :  { %654 = vmatprep.subr.bf16.mxu1 %v727_v4  ;;  %v688_v59 = vpack.c.bf16 %v354_v58, %v353_v57  ;;  %v355_v6 = vld [vmem:[%s1053_s5 + $0x40] sm:$0xff]  ;;  %v357_v8 = vld [vmem:[%s1053_s5 + $0x50] sm:$0xf] }
  0x24   :  { %174 = vmatmul.mubr.f32.vlgmr.msra.gmra.mrb[0].mxu0 %v93_v61  ;;  %v472_v9 = vld [vmem:[%s1052_s4] ss:$0 sm:$0xff]  ;;  %s731_s4 = smov [#allocation2]  }
  0x25   :  { %659 = vmatpush3.bf16.msra.mxu0 %v658_v27  ;;  %570 = vmatprep.mubr.msk.f32.mxu0 %vm730_vm1, %v729_v46  ;;  %v474_v14 = vld [vmem:[%s1054_s6] ss:$0 sm:$0xff] }
  0x26   :  { %656 = vmatpush1.bf16.msra.mxu1 %v655_v26  ;;  %660 = vmatprep.subr.bf16.mxu0 %v727_v4 }
  0x27   :  { %678 = vmatprep.subr.bf16.mxu1 %v727_v4 }
  0x29   :  { %244 = vmatmul.mubr.f32.vlgmr.msra.gmra.mrb[0].mxu1 %v100_v1  ;;  %662 = vmatpush3.bf16.msra.mxu0 %v661_v30 }
  0x2a   :  { %663 = vmatprep.subr.bf16.mxu0 %v727_v4  ;;  %595 = vmatprep.mubr.msk.f32.mxu1 %vm730_vm1, %v729_v46 }
  0x2b   :  { %680 = vmatpush3.bf16.msra.mxu1 %v679_v51 }
  0x2c   :  { %681 = vmatprep.subr.bf16.mxu1 %v727_v4 }
  0x2d   :  { %665 = vmatpush3.bf16.msra.mxu0 %v664_v33 }
  0x2e   :  { %666 = vmatprep.subr.bf16.mxu0 %v727_v4 }
  0x2f   :  { %683 = vmatpush3.bf16.msra.mxu1 %v682_v53 }
  0x30   :  { %684 = vmatprep.subr.bf16.mxu1 %v727_v4 }
  0x31   :  { %668 = vmatpush3.bf16.msra.mxu0 %v667_v36 }
  0x32   :  { %669 = vmatprep.subr.bf16.mxu0 %v727_v4 }
  0x33   :  { %686 = vmatpush3.bf16.msra.mxu1 %v685_v56 }
  0x34   :  { %687 = vmatprep.subr.bf16.mxu1 %v727_v4 }
  0x35   :  { %671 = vmatpush3.bf16.msra.mxu0 %v670_v39 }
  0x36   :  { %672 = vmatprep.subr.bf16.mxu0 %v727_v4 }
  0x37   :  { %689 = vmatpush3.bf16.msra.mxu1 %v688_v59 }
  0x38   :  { %690 = vmatprep.subr.bf16.mxu1 %v727_v4 }
  0x39   :  { %674 = vmatpush3.bf16.msra.mxu0 %v673_v42 }
  0x3a   :  { %675 = vmatprep.subr.bf16.mxu0 %v727_v4  ;;  %v356_v4 = vld [vmem:[%s1053_s5 + $0x48] sm:$0xff]  ;;  %s462_s5 = sshll.u32 %s731_s4, 4  ;;  %s463_s5 = int_to_ptr.vmem [resolvable:$true] %s462_s5 }
  0x3b   :  { %v691_v7 = vpack.c.bf16 %v356_v4, %v355_v6  ;;  %s703_s6 = scalar_lea.vmem %s463_s5, 32  ;;  %p708_p1 = scmp.lt.s32.totalorder %s463_s5, %s463_s5 }
  0x3c   :  { %p704_p0 = scmp.ne.s32.totalorder %s463_s5, %s703_s6  ;;  %p709_p2 = scmp.lt.s32.totalorder %s703_s6, %s703_s6 }
  0x3d   :  { %677 = vmatpush3.bf16.msra.mxu0 %v676_v45  ;;  %692 = vmatpush3.bf16.msra.mxu1 %v691_v7 }
  0x3e   :  { %568 = vmatprep.subr.mxu0 %v729_v46  ;;  %593 = vmatprep.subr.mxu1 %v729_v46  ;;  %p710_p3 = por %p709_p2, %p708_p1 }
  0x40   :  { %p711_p4 = pnand %p710_p3, %p704_p0 }
  0x41   :  { %569 = vmatpush3.msra.mxu0 %v264_v47  ;;  %594 = vmatpush3.msk.msra.mxu1 %vm369_vm3, %v357_v8 }
  0xf7   :  { %v509_v60 = vpop.f32.mrb[0].mxu0 }
  0xf8   :  { %v510_v61 = vpop.f32.mrb[1].mxu0 }
  0xf9   :  { %v511_v63 = vadd.f32 %v510_v61, %v509_v60 }
  0xfb   :  { %v176_v0 = vadd.f32 %v511_v63, %v470_v62 }
  0xfc   :  { %v245_v1 = vpop.f32.mrb[0].mxu1 }
  0xfd   :  { %v247_v2 = vpop.f32.mrb[1].mxu1  ;;  %v246_v3 = vadd.f32 %v245_v1, %v176_v0 }
  0xff   :  { %v249_v5 = vmax.f32 %v246_v3, 0.0 }
 0x101   :  { %571 = vmatmul.mubr.msk.f32.vlgmr.msra.gmra.mrb[2].mxu0 %vm272_vm2, %v249_v5 }
 0x1d4   :  { %v342_v10 = vpop.f32.mrb[2].mxu0 }
 0x1d5   :  { %v343_v11 = vadd.f32 %v472_v9, %v342_v10  ;;  %v572_v12 = vpop.f32.mrb[3].mxu0 }
 0x1d7   :  { %v346_v13 = vmax.f32 %v343_v11, 0.0 }
 0x1d9   :  { %596 = vmatmul.mubr.msk.f32.vlgmr.msra.gmra.mrb[2].mxu1 %vm365_vm4, %v346_v13 }
 0x2ac   :  { %v439_v15 = vpop.f32.mrb[2].mxu1 }
 0x2ad   :  { %v440_v16 = vadd.f32 %v474_v14, %v439_v15  ;;  %v597_v17 = vpop.f32.mrb[3].mxu1 }
 0x2af   :  { %v444_v18 = vsel %vm443_vm5, %v440_v16, -inf }
 0x2b0   :  { %445 = vmax.xlane.f32.xlu0 %v444_v18 }
 0x33d   :  { %v446_v19 = vpop.xlane.xlu0 %445 }
 0x33e   :  { %v447_v20 = vsub.f32 %v440_v16, %v446_v19 }
 0x340   :  { %v448_v21 = vmul.f32 1.442695, %v447_v20 }
 0x342   :  { %699 = vpow2.f32 %v448_v21 }
 0x34c   :  { %v700_v22 = vpop.eup %699 }
 0x34d   :  { %v450_v23 = vsel %vm443_vm5, %v700_v22, 0.0 }
 0x34e   :  { %451 = vadd.xlane.f32.xlu0 %v450_v23 }
 0x3db   :  { %v452_v24 = vpop.xlane.xlu0 %451 }
 0x3dc   :  { %701 = vrcp.f32 %v452_v24 }
 0x3e6   :  { %v702_v25 = vpop.eup %701 }
 0x3e7   :  { %v454_v26 = vmul.f32 %v702_v25, %v700_v22 }
 0x3e9   :  { %455 = vst.msk [vmem:[#allocation2] sm:$0x3] %vm443_vm5, %v454_v26 }
 0x3ea   :  { %714 = shalt.err (!%p711_p4)
}
 0x3eb   :  { %s715_s16 = scalar_lea.hbm %s1055_s7, 32 }
 0x3ec   :  { %p716_p5 = scmp.ne.s32.totalorder %s1055_s7, %s715_s16  ;;  %p719_p6 = scmp.lt.u32.totalorder %s715_s16, %s1055_s7 }
 0x3ee   :  { %p721_p7 = pnand %p719_p6, %p716_p5 }
 0x3f0   :  { %724 = shalt.err (!%p721_p7)
}
 0x3f1   :  { %465 = dma.vmem_to_hbm [thread:$0]  %s463_s5, 32, %s1055_s7, [#allocation3]  }
 0x3f2   :  { %725 = dma.done.wait [#allocation3], 32  }
 0x3f3   :  { %726 = vsyncadd [#allocation3], 4294967264 }
 0x3f4   :  { %469 = vsyncpa [#allocation3], 1 }

</bundles_post_ra>
